<compile_context>
chip_gen: v7x
topology: tpu7x:2x2x1
jax: 0.10.0
libtpu: 0.0.40
codegen_flags: <defaults>
</compile_context>

<pallas_src>
import functools

import jax
import jax.numpy as jnp
from jax import lax
from jax.experimental import pallas as pl
from jax.experimental.pallas import tpu as pltpu


CONV_CHANNELS = (32, 64, 64)
CONV_KSIZES = (8, 4, 3)
CONV_STRIDES = (4, 2, 2)
CONV_PADS = (1, 0, 0)
FC_SIZES = ((320, 128), (128, 64), (64, 1))


def _round_up(x, m):
    return (x + m - 1) // m * m


# --------------------------- Pallas kernels ---------------------------------

def _gemm_bias_relu_kernel(x_ref, w_ref, b_ref, o_ref):
    # x: (tm, K) row tile, w: (K, N) resident, b: (1, N) resident.
    acc = jnp.dot(x_ref[...], w_ref[...], preferred_element_type=jnp.float32)
    o_ref[...] = jnp.maximum(acc + b_ref[...], 0.0).astype(o_ref.dtype)


def _mlp_head_kernel(xT_ref, w1_ref, b1_ref, w2_ref, b2_ref, w3_ref, b3_ref, v_ref):
    # Transposed layout: batch lives on the 128-lane axis.
    # xT: (320, tB), w1: (128, 320), w2: (64, 128), w3: (1, 64)   (PyTorch (out,in))
    xT = xT_ref[...]
    h1 = jnp.tanh(
        jnp.dot(w1_ref[...], xT, preferred_element_type=jnp.float32) + b1_ref[...]
    )                                                # (128, tB) f32 (tanh kept in f32)
    h1 = h1.astype(w2_ref.dtype)
    h2 = jnp.tanh(
        jnp.dot(w2_ref[...], h1, preferred_element_type=jnp.float32) + b2_ref[...]
    )                                                # (64, tB) f32
    h2 = h2.astype(w3_ref.dtype)
    v = jnp.dot(w3_ref[...], h2, preferred_element_type=jnp.float32) + b3_ref[0, 0]
    v_ref[...] = v.astype(v_ref.dtype)               # (1, tB) lane-dense store


# --------------------------- wrappers ----------------------------------------

def _extract_patches(x_nhwc, ksize, stride, padding):
    """im2col: (B,H,W,C) -> (B,OH,OW,ksize*ksize*C). Pure layout plumbing (XLA)."""
    if padding:
        x_nhwc = jnp.pad(
            x_nhwc, ((0, 0), (padding, padding), (padding, padding), (0, 0)))
    B, H, W, C = x_nhwc.shape
    OH = (H - ksize) // stride + 1
    OW = (W - ksize) // stride + 1
    cols = []
    for i in range(ksize):
        for j in range(ksize):
            cols.append(
                x_nhwc[:, i:i + stride * (OH - 1) + 1:stride,
                          j:j + stride * (OW - 1) + 1:stride, :])
    return jnp.concatenate(cols, axis=-1)   # last-dim order: (i, j, cin)


def _conv_gemm(patches, w_flat, b_row, *, matmul_dtype, tile_m=1024):
    """ReLU(patches @ w + b) via Pallas, tiled over rows with resident weights."""
    B, OH, OW, K = patches.shape
    N = w_flat.shape[1]
    M = B * OH * OW
    tm = min(tile_m, _round_up(M, 8))
    M_pad = _round_up(M, tm)
    x2 = patches.reshape(M, K).astype(matmul_dtype)
    if M_pad != M:
        x2 = jnp.pad(x2, ((0, M_pad - M), (0, 0)))
    out = pl.pallas_call(
        _gemm_bias_relu_kernel,
        out_shape=jax.ShapeDtypeStruct((M_pad, N), jnp.float32),
        grid=(M_pad // tm,),
        in_specs=[
            pl.BlockSpec((tm, K), lambda i: (i, 0)),
            pl.BlockSpec((K, N), lambda i: (0, 0)),   # weights stay VMEM-resident
            pl.BlockSpec((1, N), lambda i: (0, 0)),
        ],
        out_specs=pl.BlockSpec((tm, N), lambda i: (i, 0)),
        compiler_params=pltpu.CompilerParams(dimension_semantics=("parallel",)),
    )(x2, w_flat.astype(matmul_dtype), b_row)
    return out[:M].reshape(B, OH, OW, N)


def _mlp_head(feats, fw1, fb1, fw2, fb2, fw3, fb3, *, matmul_dtype, tile_b=1024):
    """fc1->tanh->fc2->tanh->fc3 as one fused kernel, batch on the lane axis."""
    B, F = feats.shape
    tb = min(tile_b, _round_up(B, 128))
    B_pad = _round_up(B, tb)
    xT = jnp.pad(feats, ((0, B_pad - B), (0, 0))).T.astype(matmul_dtype)  # (F, B_pad)
    H1, H2 = fw1.shape[0], fw2.shape[0]
    out = pl.pallas_call(
        _mlp_head_kernel,
        out_shape=jax.ShapeDtypeStruct((1, B_pad), jnp.float32),
        grid=(B_pad // tb,),
        in_specs=[
            pl.BlockSpec((F, tb), lambda i: (0, i)),
            pl.BlockSpec((H1, F), lambda i: (0, 0)),
            pl.BlockSpec((H1, 1), lambda i: (0, 0)),
            pl.BlockSpec((H2, H1), lambda i: (0, 0)),
            pl.BlockSpec((H2, 1), lambda i: (0, 0)),
            pl.BlockSpec((1, H2), lambda i: (0, 0)),
            pl.BlockSpec(memory_space=pltpu.SMEM),     # fc3 bias as SMEM scalar
        ],
        out_specs=pl.BlockSpec((1, tb), lambda i: (0, i)),
        compiler_params=pltpu.CompilerParams(dimension_semantics=("parallel",)),
    )(xT, fw1.astype(matmul_dtype), fb1, fw2.astype(matmul_dtype), fb2,
      fw3.astype(matmul_dtype), fb3)
    return out[0, :B].reshape(B, 1)


def trpo_critic_cnn(x_nchw, params, *, matmul_dtype=jnp.float32):
    """Pallas forward pass. x_nchw: (B, C, H, W) float32 -> value (B, 1)."""
    x = jnp.transpose(x_nchw, (0, 2, 3, 1)).astype(jnp.float32)     # NHWC
    for (w, b), s, p in zip(params["conv"], CONV_STRIDES, CONV_PADS):
        k = w.shape[0]
        patches = _extract_patches(x, k, s, p)                      # (B,OH,OW,k*k*Cin)
        w_flat = w.reshape(-1, w.shape[-1])                         # (k*k*Cin, Cout)
        x = _conv_gemm(patches, w_flat, b.reshape(1, -1), matmul_dtype=matmul_dtype)
    B = x.shape[0]
    feats = x.reshape(B, -1)                                        # (B, 320)
    (fw1, fb1), (fw2, fb2), (fw3, fb3) = params["fc"]
    return _mlp_head(feats, fw1, fb1.reshape(-1, 1), fw2, fb2.reshape(-1, 1),
                     fw3, fb3.reshape(1, 1), matmul_dtype=matmul_dtype)


# --------------------------- params + pure-JAX reference ---------------------

def init_params(key, input_channels):
    """nn.Conv2d / nn.Linear default-style init (uniform +-1/sqrt(fan_in))."""
    keys = jax.random.split(key, 12)
    conv, ki, cin = [], 0, input_channels
    for cout, k in zip(CONV_CHANNELS, CONV_KSIZES):
        fan_in = cin * k * k
        bound = 1.0 / jnp.sqrt(jnp.float32(fan_in))
        w = jax.random.uniform(keys[ki], (k, k, cin, cout), jnp.float32, -bound, bound)
        b = jax.random.uniform(keys[ki + 1], (cout,), jnp.float32, -bound, bound)
        conv.append((w, b))
        cin, ki = cout, ki + 2
    fcs = []
    for fi, fo in FC_SIZES:
        bound = 1.0 / jnp.sqrt(jnp.float32(fi))
        w = jax.random.uniform(keys[ki], (fo, fi), jnp.float32, -bound, bound)
        b = jax.random.uniform(keys[ki + 1], (fo,), jnp.float32, -bound, bound)
        fcs.append((w, b))
        ki += 2
    return {"conv": conv, "fc": fcs}


def trpo_critic_cnn_ref(x_nchw, params):
    x = jnp.transpose(x_nchw, (0, 2, 3, 1)).astype(jnp.float32)
    for (w, b), s, p in zip(params["conv"], CONV_STRIDES, CONV_PADS):
        x = lax.conv_general_dilated(
            x, w, window_strides=(s, s), padding=((p, p), (p, p)),
            dimension_numbers=("NHWC", "HWIO", "NHWC"),
            precision=lax.Precision.HIGHEST)
        x = jnp.maximum(x + b, 0.0)
    B = x.shape[0]
    h = x.reshape(B, -1)
    (fw1, fb1), (fw2, fb2), (fw3, fb3) = params["fc"]
    h = jnp.tanh(jnp.matmul(h, fw1.T, precision=lax.Precision.HIGHEST) + fb1)
    h = jnp.tanh(jnp.matmul(h, fw2.T, precision=lax.Precision.HIGHEST) + fb2)
    return jnp.matmul(h, fw3.T, precision=lax.Precision.HIGHEST) + fb3


# --------------------------- demo / self-check --------------------------------

if __name__ == "__main__":
    key = jax.random.PRNGKey(0)
    k_x, k_p = jax.random.split(key)

    # 34x98 input -> conv stack -> (64, 1, 5) -> flatten 320 = fc_input_size of the spec.
    batch, in_ch, H, W = 2, 4, 34, 98
    x = jax.random.normal(k_x, (batch, in_ch, H, W), jnp.float32)
    params = init_params(k_p, in_ch)

    fwd_f32 = jax.jit(functools.partial(trpo_critic_cnn, matmul_dtype=jnp.float32))
    fwd_bf16 = jax.jit(functools.partial(trpo_critic_cnn, matmul_dtype=jnp.bfloat16))

    v = fwd_f32(x, params)
    jax.block_until_ready(v)
    v_ref = trpo_critic_cnn_ref(x, params)
    assert v.shape == (batch, 1)
    assert jnp.allclose(v, v_ref, atol=2e-3, rtol=2e-3), (v, v_ref)

    # bf16 matmul operands / f32 accumulation path (halves HBM traffic at large B).
    v_bf16 = fwd_bf16(x, params)
    jax.block_until_ready(v_bf16)
    assert v_bf16.shape == (batch, 1)
    assert jnp.allclose(v_bf16, v_ref, atol=5e-2, rtol=5e-2), (v_bf16, v_ref)

    print("KERNEL_OK")
</pallas_src>

<mosaic_0001>
module attributes {stable_mosaic.version = 11 : i64} {
  func.func @_gemm_bias_relu_kernel(%arg0: i32, %arg1: memref<384x256xf32, #tpu.memory_space<vmem>>, %arg2: memref<256x32xf32, #tpu.memory_space<vmem>>, %arg3: memref<1x32xf32, #tpu.memory_space<vmem>>, %arg4: memref<384x32xf32, #tpu.memory_space<vmem>>) attributes {dimension_semantics = [#tpu.dimension_semantics<parallel>], iteration_bounds = array<i64: 1>, scalar_prefetch = 0 : i64, scratch_operands = 0 : i64, tpu.core_type = #tpu.core_type<tc>, window_params = [{transform_indices = @transform_0, window_bounds = array<i64: 384, 256>}, {pipeline_mode = #tpu.pipeline_mode<synchronous>, transform_indices = @transform_1, window_bounds = array<i64: 256, 32>}, {pipeline_mode = #tpu.pipeline_mode<synchronous>, transform_indices = @transform_2, window_bounds = array<i64: 1, 32>}, {transform_indices = @transform_3, window_bounds = array<i64: 384, 32>}]} {
    %c0 = arith.constant 0 : index
    %c0_0 = arith.constant 0 : index
    %0 = vector.load %arg1[%c0, %c0_0] : memref<384x256xf32, #tpu.memory_space<vmem>>, vector<384x256xf32>
    %c0_1 = arith.constant 0 : index
    %c0_2 = arith.constant 0 : index
    %1 = vector.load %arg2[%c0_1, %c0_2] : memref<256x32xf32, #tpu.memory_space<vmem>>, vector<256x32xf32>
    %cst = arith.constant dense<0.000000e+00> : vector<384x32xf32>
    %2 = tpu.matmul %0, %1, %cst {dimension_numbers = #tpu.dot_dimension_numbers<[1], [0], [0], [1], [0, 0, 1, 1], [], []>} : vector<384x256xf32>, vector<256x32xf32>, vector<384x32xf32> -> vector<384x32xf32>
    %c0_3 = arith.constant 0 : index
    %c0_4 = arith.constant 0 : index
    %3 = vector.load %arg3[%c0_3, %c0_4] : memref<1x32xf32, #tpu.memory_space<vmem>>, vector<1x32xf32>
    %4 = vector.broadcast %3 : vector<1x32xf32> to vector<384x32xf32>
    %5 = arith.addf %2, %4 : vector<384x32xf32>
    %cst_5 = arith.constant 0.000000e+00 : f32
    %6 = vector.broadcast %cst_5 : f32 to vector<384x32xf32>
    %7 = arith.maximumf %5, %6 : vector<384x32xf32>
    %c0_6 = arith.constant 0 : index
    %c0_7 = arith.constant 0 : index
    %8 = vector.load %arg4[%c0_6, %c0_7] : memref<384x32xf32, #tpu.memory_space<vmem>>, vector<384x32xf32>
    tpu.vector_store %arg4[%c0_6, %c0_7], %7 {strides = array<i32>} : memref<384x32xf32, #tpu.memory_space<vmem>>, vector<384x32xf32>,
    return
  }
  func.func @transform_0(%arg0: i32) -> (i32, i32) {
    %c0_i32 = arith.constant 0 : i32
    %c0_i32_0 = arith.constant 0 : i32
    return %arg0, %c0_i32 : i32, i32
  }
  func.func @transform_1(%arg0: i32) -> (i32, i32) {
    %c0_i32 = arith.constant 0 : i32
    %c0_i32_0 = arith.constant 0 : i32
    %c0_i32_1 = arith.constant 0 : i32
    return %c0_i32, %c0_i32_0 : i32, i32
  }
  func.func @transform_2(%arg0: i32) -> (i32, i32) {
    %c0_i32 = arith.constant 0 : i32
    %c0_i32_0 = arith.constant 0 : i32
    %c0_i32_1 = arith.constant 0 : i32
    return %c0_i32, %c0_i32_0 : i32, i32
  }
  func.func @transform_3(%arg0: i32) -> (i32, i32) {
    %c0_i32 = arith.constant 0 : i32
    %c0_i32_0 = arith.constant 0 : i32
    return %arg0, %c0_i32 : i32, i32
  }
}

module attributes {stable_mosaic.version = 11 : i64} {
  func.func @_gemm_bias_relu_kernel(%arg0: i32, %arg1: memref<72x512xf32, #tpu.memory_space<vmem>>, %arg2: memref<512x64xf32, #tpu.memory_space<vmem>>, %arg3: memref<1x64xf32, #tpu.memory_space<vmem>>, %arg4: memref<72x64xf32, #tpu.memory_space<vmem>>) attributes {dimension_semantics = [#tpu.dimension_semantics<parallel>], iteration_bounds = array<i64: 1>, scalar_prefetch = 0 : i64, scratch_operands = 0 : i64, tpu.core_type = #tpu.core_type<tc>, window_params = [{transform_indices = @transform_0, window_bounds = array<i64: 72, 512>}, {pipeline_mode = #tpu.pipeline_mode<synchronous>, transform_indices = @transform_1, window_bounds = array<i64: 512, 64>}, {pipeline_mode = #tpu.pipeline_mode<synchronous>, transform_indices = @transform_2, window_bounds = array<i64: 1, 64>}, {transform_indices = @transform_3, window_bounds = array<i64: 72, 64>}]} {
    %c0 = arith.constant 0 : index
    %c0_0 = arith.constant 0 : index
    %0 = vector.load %arg1[%c0, %c0_0] : memref<72x512xf32, #tpu.memory_space<vmem>>, vector<72x512xf32>
    %c0_1 = arith.constant 0 : index
    %c0_2 = arith.constant 0 : index
    %1 = vector.load %arg2[%c0_1, %c0_2] : memref<512x64xf32, #tpu.memory_space<vmem>>, vector<512x64xf32>
    %cst = arith.constant dense<0.000000e+00> : vector<72x64xf32>
    %2 = tpu.matmul %0, %1, %cst {dimension_numbers = #tpu.dot_dimension_numbers<[1], [0], [0], [1], [0, 0, 1, 1], [], []>} : vector<72x512xf32>, vector<512x64xf32>, vector<72x64xf32> -> vector<72x64xf32>
    %c0_3 = arith.constant 0 : index
    %c0_4 = arith.constant 0 : index
    %3 = vector.load %arg3[%c0_3, %c0_4] : memref<1x64xf32, #tpu.memory_space<vmem>>, vector<1x64xf32>
    %4 = vector.broadcast %3 : vector<1x64xf32> to vector<72x64xf32>
    %5 = arith.addf %2, %4 : vector<72x64xf32>
    %cst_5 = arith.constant 0.000000e+00 : f32
    %6 = vector.broadcast %cst_5 : f32 to vector<72x64xf32>
    %7 = arith.maximumf %5, %6 : vector<72x64xf32>
    %c0_6 = arith.constant 0 : index
    %c0_7 = arith.constant 0 : index
    %8 = vector.load %arg4[%c0_6, %c0_7] : memref<72x64xf32, #tpu.memory_space<vmem>>, vector<72x64xf32>
    tpu.vector_store %arg4[%c0_6, %c0_7], %7 {strides = array<i32>} : memref<72x64xf32, #tpu.memory_space<vmem>>, vector<72x64xf32>,
    return
  }
  func.func @transform_0(%arg0: i32) -> (i32, i32) {
    %c0_i32 = arith.constant 0 : i32
    %c0_i32_0 = arith.constant 0 : i32
    return %arg0, %c0_i32 : i32, i32
  }
  func.func @transform_1(%arg0: i32) -> (i32, i32) {
    %c0_i32 = arith.constant 0 : i32
    %c0_i32_0 = arith.constant 0 : i32
    %c0_i32_1 = arith.constant 0 : i32
    return %c0_i32, %c0_i32_0 : i32, i32
  }
  func.func @transform_2(%arg0: i32) -> (i32, i32) {
    %c0_i32 = arith.constant 0 : i32
    %c0_i32_0 = arith.constant 0 : i32
    %c0_i32_1 = arith.constant 0 : i32
    return %c0_i32, %c0_i32_0 : i32, i32
  }
  func.func @transform_3(%arg0: i32) -> (i32, i32) {
    %c0_i32 = arith.constant 0 : i32
    %c0_i32_0 = arith.constant 0 : i32
    return %arg0, %c0_i32 : i32, i32
  }
}

module attributes {stable_mosaic.version = 11 : i64} {
  func.func @_gemm_bias_relu_kernel(%arg0: i32, %arg1: memref<16x576xf32, #tpu.memory_space<vmem>>, %arg2: memref<576x64xf32, #tpu.memory_space<vmem>>, %arg3: memref<1x64xf32, #tpu.memory_space<vmem>>, %arg4: memref<16x64xf32, #tpu.memory_space<vmem>>) attributes {dimension_semantics = [#tpu.dimension_semantics<parallel>], iteration_bounds = array<i64: 1>, scalar_prefetch = 0 : i64, scratch_operands = 0 : i64, tpu.core_type = #tpu.core_type<tc>, window_params = [{transform_indices = @transform_0, window_bounds = array<i64: 16, 576>}, {pipeline_mode = #tpu.pipeline_mode<synchronous>, transform_indices = @transform_1, window_bounds = array<i64: 576, 64>}, {pipeline_mode = #tpu.pipeline_mode<synchronous>, transform_indices = @transform_2, window_bounds = array<i64: 1, 64>}, {transform_indices = @transform_3, window_bounds = array<i64: 16, 64>}]} {
    %c0 = arith.constant 0 : index
    %c0_0 = arith.constant 0 : index
    %0 = vector.load %arg1[%c0, %c0_0] : memref<16x576xf32, #tpu.memory_space<vmem>>, vector<16x576xf32>
    %c0_1 = arith.constant 0 : index
    %c0_2 = arith.constant 0 : index
    %1 = vector.load %arg2[%c0_1, %c0_2] : memref<576x64xf32, #tpu.memory_space<vmem>>, vector<576x64xf32>
    %cst = arith.constant dense<0.000000e+00> : vector<16x64xf32>
    %2 = tpu.matmul %0, %1, %cst {dimension_numbers = #tpu.dot_dimension_numbers<[1], [0], [0], [1], [0, 0, 1, 1], [], []>} : vector<16x576xf32>, vector<576x64xf32>, vector<16x64xf32> -> vector<16x64xf32>
    %c0_3 = arith.constant 0 : index
    %c0_4 = arith.constant 0 : index
    %3 = vector.load %arg3[%c0_3, %c0_4] : memref<1x64xf32, #tpu.memory_space<vmem>>, vector<1x64xf32>
    %4 = vector.broadcast %3 : vector<1x64xf32> to vector<16x64xf32>
    %5 = arith.addf %2, %4 : vector<16x64xf32>
    %cst_5 = arith.constant 0.000000e+00 : f32
    %6 = vector.broadcast %cst_5 : f32 to vector<16x64xf32>
    %7 = arith.maximumf %5, %6 : vector<16x64xf32>
    %c0_6 = arith.constant 0 : index
    %c0_7 = arith.constant 0 : index
    %8 = vector.load %arg4[%c0_6, %c0_7] : memref<16x64xf32, #tpu.memory_space<vmem>>, vector<16x64xf32>
    tpu.vector_store %arg4[%c0_6, %c0_7], %7 {strides = array<i32>} : memref<16x64xf32, #tpu.memory_space<vmem>>, vector<16x64xf32>,
    return
  }
  func.func @transform_0(%arg0: i32) -> (i32, i32) {
    %c0_i32 = arith.constant 0 : i32
    %c0_i32_0 = arith.constant 0 : i32
    return %arg0, %c0_i32 : i32, i32
  }
  func.func @transform_1(%arg0: i32) -> (i32, i32) {
    %c0_i32 = arith.constant 0 : i32
    %c0_i32_0 = arith.constant 0 : i32
    %c0_i32_1 = arith.constant 0 : i32
    return %c0_i32, %c0_i32_0 : i32, i32
  }
  func.func @transform_2(%arg0: i32) -> (i32, i32) {
    %c0_i32 = arith.constant 0 : i32
    %c0_i32_0 = arith.constant 0 : i32
    %c0_i32_1 = arith.constant 0 : i32
    return %c0_i32, %c0_i32_0 : i32, i32
  }
  func.func @transform_3(%arg0: i32) -> (i32, i32) {
    %c0_i32 = arith.constant 0 : i32
    %c0_i32_0 = arith.constant 0 : i32
    return %arg0, %c0_i32 : i32, i32
  }
}

module attributes {stable_mosaic.version = 11 : i64} {
  func.func @_mlp_head_kernel(%arg0: i32, %arg1: memref<320x128xf32, #tpu.memory_space<vmem>>, %arg2: memref<128x320xf32, #tpu.memory_space<vmem>>, %arg3: memref<128x1xf32, #tpu.memory_space<vmem>>, %arg4: memref<64x128xf32, #tpu.memory_space<vmem>>, %arg5: memref<64x1xf32, #tpu.memory_space<vmem>>, %arg6: memref<1x64xf32, #tpu.memory_space<vmem>>, %arg7: memref<1x1xf32, #tpu.memory_space<smem>>, %arg8: memref<1x128xf32, #tpu.memory_space<vmem>>) attributes {dimension_semantics = [#tpu.dimension_semantics<parallel>], iteration_bounds = array<i64: 1>, scalar_prefetch = 0 : i64, scratch_operands = 0 : i64, tpu.core_type = #tpu.core_type<tc>, window_params = [{transform_indices = @transform_0, window_bounds = array<i64: 320, 128>}, {pipeline_mode = #tpu.pipeline_mode<synchronous>, transform_indices = @transform_1, window_bounds = array<i64: 128, 320>}, {pipeline_mode = #tpu.pipeline_mode<synchronous>, transform_indices = @transform_2, window_bounds = array<i64: 128, 1>}, {pipeline_mode = #tpu.pipeline_mode<synchronous>, transform_indices = @transform_3, window_bounds = array<i64: 64, 128>}, {pipeline_mode = #tpu.pipeline_mode<synchronous>, transform_indices = @transform_4, window_bounds = array<i64: 64, 1>}, {pipeline_mode = #tpu.pipeline_mode<synchronous>, transform_indices = @transform_5, window_bounds = array<i64: 1, 64>}, {transform_indices = @transform_6, window_bounds = array<i64: 1, 1>}, {transform_indices = @transform_7, window_bounds = array<i64: 1, 128>}]} {
    %c0 = arith.constant 0 : index
    %c0_0 = arith.constant 0 : index
    %0 = vector.load %arg1[%c0, %c0_0] : memref<320x128xf32, #tpu.memory_space<vmem>>, vector<320x128xf32>
    %c0_1 = arith.constant 0 : index
    %c0_2 = arith.constant 0 : index
    %1 = vector.load %arg2[%c0_1, %c0_2] : memref<128x320xf32, #tpu.memory_space<vmem>>, vector<128x320xf32>
    %cst = arith.constant dense<0.000000e+00> : vector<128x128xf32>
    %2 = tpu.matmul %1, %0, %cst {dimension_numbers = #tpu.dot_dimension_numbers<[1], [0], [0], [1], [0, 0, 1, 1], [], []>} : vector<128x320xf32>, vector<320x128xf32>, vector<128x128xf32> -> vector<128x128xf32>
    %c0_3 = arith.constant 0 : index
    %c0_4 = arith.constant 0 : index
    %3 = vector.load %arg3[%c0_3, %c0_4] : memref<128x1xf32, #tpu.memory_space<vmem>>, vector<128x1xf32>
    %4 = vector.broadcast %3 : vector<128x1xf32> to vector<128x128xf32>
    %5 = arith.addf %2, %4 : vector<128x128xf32>
    %6 = math.tanh %5 : vector<128x128xf32>
    %c0_5 = arith.constant 0 : index
    %c0_6 = arith.constant 0 : index
    %7 = vector.load %arg4[%c0_5, %c0_6] : memref<64x128xf32, #tpu.memory_space<vmem>>, vector<64x128xf32>
    %cst_7 = arith.constant dense<0.000000e+00> : vector<64x128xf32>
    %8 = tpu.matmul %7, %6, %cst_7 {dimension_numbers = #tpu.dot_dimension_numbers<[1], [0], [0], [1], [0, 0, 1, 1], [], []>} : vector<64x128xf32>, vector<128x128xf32>, vector<64x128xf32> -> vector<64x128xf32>
    %c0_8 = arith.constant 0 : index
    %c0_9 = arith.constant 0 : index
    %9 = vector.load %arg5[%c0_8, %c0_9] : memref<64x1xf32, #tpu.memory_space<vmem>>, vector<64x1xf32>
    %10 = vector.broadcast %9 : vector<64x1xf32> to vector<64x128xf32>
    %11 = arith.addf %8, %10 : vector<64x128xf32>
    %12 = math.tanh %11 : vector<64x128xf32>
    %c0_10 = arith.constant 0 : index
    %c0_11 = arith.constant 0 : index
    %13 = vector.load %arg6[%c0_10, %c0_11] : memref<1x64xf32, #tpu.memory_space<vmem>>, vector<1x64xf32>
    %cst_12 = arith.constant dense<0.000000e+00> : vector<1x128xf32>
    %14 = tpu.matmul %13, %12, %cst_12 {dimension_numbers = #tpu.dot_dimension_numbers<[1], [0], [0], [1], [0, 0, 1, 1], [], []>} : vector<1x64xf32>, vector<64x128xf32>, vector<1x128xf32> -> vector<1x128xf32>
    %c0_13 = arith.constant 0 : index
    %c0_14 = arith.constant 0 : index
    %15 = memref.load %arg7[%c0_13, %c0_14] : memref<1x1xf32, #tpu.memory_space<smem>>
    %16 = vector.broadcast %15 : f32 to vector<1x128xf32>
    %17 = arith.addf %14, %16 : vector<1x128xf32>
    %c0_15 = arith.constant 0 : index
    %c0_16 = arith.constant 0 : index
    %18 = vector.load %arg8[%c0_15, %c0_16] : memref<1x128xf32, #tpu.memory_space<vmem>>, vector<1x128xf32>
    tpu.vector_store %arg8[%c0_15, %c0_16], %17 {strides = array<i32>} : memref<1x128xf32, #tpu.memory_space<vmem>>, vector<1x128xf32>,
    return
  }
  func.func @transform_0(%arg0: i32) -> (i32, i32) {
    %c0_i32 = arith.constant 0 : i32
    %c0_i32_0 = arith.constant 0 : i32
    return %c0_i32, %arg0 : i32, i32
  }
  func.func @transform_1(%arg0: i32) -> (i32, i32) {
    %c0_i32 = arith.constant 0 : i32
    %c0_i32_0 = arith.constant 0 : i32
    %c0_i32_1 = arith.constant 0 : i32
    return %c0_i32, %c0_i32_0 : i32, i32
  }
  func.func @transform_2(%arg0: i32) -> (i32, i32) {
    %c0_i32 = arith.constant 0 : i32
    %c0_i32_0 = arith.constant 0 : i32
    %c0_i32_1 = arith.constant 0 : i32
    return %c0_i32, %c0_i32_0 : i32, i32
  }
  func.func @transform_3(%arg0: i32) -> (i32, i32) {
    %c0_i32 = arith.constant 0 : i32
    %c0_i32_0 = arith.constant 0 : i32
    %c0_i32_1 = arith.constant 0 : i32
    return %c0_i32, %c0_i32_0 : i32, i32
  }
  func.func @transform_4(%arg0: i32) -> (i32, i32) {
    %c0_i32 = arith.constant 0 : i32
    %c0_i32_0 = arith.constant 0 : i32
    %c0_i32_1 = arith.constant 0 : i32
    return %c0_i32, %c0_i32_0 : i32, i32
  }
  func.func @transform_5(%arg0: i32) -> (i32, i32) {
    %c0_i32 = arith.constant 0 : i32
    %c0_i32_0 = arith.constant 0 : i32
    %c0_i32_1 = arith.constant 0 : i32
    return %c0_i32, %c0_i32_0 : i32, i32
  }
  func.func @transform_6(%arg0: i32) -> (i32, i32) {
    %c0_i32 = arith.constant 0 : i32
    %c0_i32_0 = arith.constant 0 : i32
    %c0_i32_1 = arith.constant 0 : i32
    return %c0_i32, %c0_i32_0 : i32, i32
  }
  func.func @transform_7(%arg0: i32) -> (i32, i32) {
    %c0_i32 = arith.constant 0 : i32
    %c0_i32_0 = arith.constant 0 : i32
    return %c0_i32, %arg0 : i32, i32
  }
}

</mosaic_0001>

<bundles_post_ra>
// kernel: trpo_critic_cnn.4
= control target key start
LH: loop header
LB: loop body
LE: loop exit
PB: predicated region body
PF: predicated region fallthrough
CT: control target
= control target key end

     0   :  { %v637_v0 = vmov 0.0|0.0   ;;  %vm502_vm0 = vcmask 261120   ;;  %s1319_s1 = inlined_call_operand.vmem [shape: f32[256,32], index: 1, kind: input, shape index: {}]   ;;  %s1320_s0 = inlined_call_operand.vmem [shape: f32[384,256], index: 0, kind: input, shape index: {}]   ;;  %s1321_s2 = inlined_call_operand.vmem [shape: f32[1,32], index: 2, kind: input, shape index: {}]   ;;  %s1322_s3 = inlined_call_operand.vmem [shape: f32[384,32], index: 3, kind: output, shape index: {}]  }
   0x1   :  { %556 = vmatprep.subr.bf16.mxu0 %v637_v0  ;;  %604 = vmatprep.subr.bf16.mxu1 %v637_v0  ;;  %v110_v1 = vld [vmem:[%s1319_s1] sm:$0xff]  ;;  %v111_v2 = vld [vmem:[%s1319_s1 + $0x8] sm:$0xff]  ;;  %v112_v3 = vld [vmem:[%s1319_s1 + $0x10] sm:$0xff] }
   0x2   :  { %v557_v4 = vpack.c.bf16 %v111_v2, %v110_v1  ;;  %v113_v5 = vld [vmem:[%s1319_s1 + $0x18] sm:$0xff]  ;;  %v114_v7 = vld [vmem:[%s1319_s1 + $0x20] sm:$0xff]  ;;  %v115_v8 = vld [vmem:[%s1319_s1 + $0x28] sm:$0xff] }
   0x3   :  { %v560_v6 = vpack.c.bf16 %v113_v5, %v112_v3  ;;  %v563_v9 = vpack.c.bf16 %v115_v8, %v114_v7  ;;  %v116_v10 = vld [vmem:[%s1319_s1 + $0x30] sm:$0xff]  ;;  %v117_v11 = vld [vmem:[%s1319_s1 + $0x38] sm:$0xff]  ;;  %v15_v12 = vld [vmem:[%s1320_s0 + $0x8] sm:$0xff] }
   0x4   :  { %558 = vmatpush1.bf16.msra.mxu0 %v557_v4  ;;  %620 = vmatpush1.bf16.msra.mxu1 %v557_v4  ;;  %v566_v13 = vpack.c.bf16 %v117_v11, %v116_v10  ;;  %v63_v14 = vld [vmem:[%s1320_s0 + $0x188] sm:$0xff]  ;;  %v118_v15 = vld [vmem:[%s1319_s1 + $0x40] sm:$0xff]  ;;  %v120_v18 = vld [vmem:[%s1319_s1 + $0x50] sm:$0xff] }
   0x5   :  { %559 = vmatprep.subr.bf16.mxu0 %v637_v0  ;;  %605 = vmatprep.subr.bf16.mxu1 %v637_v0  ;;  %v119_v16 = vld [vmem:[%s1319_s1 + $0x48] sm:$0xff]  ;;  %v121_v19 = vld [vmem:[%s1319_s1 + $0x58] sm:$0xff]  ;;  %v122_v21 = vld [vmem:[%s1319_s1 + $0x60] sm:$0xff] }
   0x6   :  { %213 = vmatprep.mubr.f32.mxu0 %v15_v12  ;;  %333 = vmatprep.mubr.f32.mxu1 %v63_v14  ;;  %v569_v17 = vpack.c.bf16 %v119_v16, %v118_v15  ;;  %v572_v20 = vpack.c.bf16 %v121_v19, %v120_v18  ;;  %v123_v22 = vld [vmem:[%s1319_s1 + $0x68] sm:$0xff]  ;;  %v124_v24 = vld [vmem:[%s1319_s1 + $0x70] sm:$0xff]  ;;  %v125_v25 = vld [vmem:[%s1319_s1 + $0x78] sm:$0xff] }
   0x7   :  { %v575_v23 = vpack.c.bf16 %v123_v22, %v122_v21  ;;  %v578_v26 = vpack.c.bf16 %v125_v25, %v124_v24  ;;  %v126_v27 = vld [vmem:[%s1319_s1 + $0x80] sm:$0xff]  ;;  %v127_v28 = vld [vmem:[%s1319_s1 + $0x88] sm:$0xff]  ;;  %v128_v30 = vld [vmem:[%s1319_s1 + $0x90] sm:$0xff] }
   0x8   :  { %561 = vmatpush1.bf16.msra.mxu0 %v560_v6  ;;  %621 = vmatpush1.bf16.msra.mxu1 %v560_v6  ;;  %v581_v29 = vpack.c.bf16 %v127_v28, %v126_v27  ;;  %v129_v31 = vld [vmem:[%s1319_s1 + $0x98] sm:$0xff]  ;;  %v130_v33 = vld [vmem:[%s1319_s1 + $0xa0] sm:$0xff]  ;;  %v131_v34 = vld [vmem:[%s1319_s1 + $0xa8] sm:$0xff] }
   0x9   :  { %562 = vmatprep.subr.bf16.mxu0 %v637_v0  ;;  %606 = vmatprep.subr.bf16.mxu1 %v637_v0  ;;  %v584_v32 = vpack.c.bf16 %v129_v31, %v128_v30  ;;  %v587_v35 = vpack.c.bf16 %v131_v34, %v130_v33  ;;  %v132_v36 = vld [vmem:[%s1319_s1 + $0xb0] sm:$0xff]  ;;  %v133_v37 = vld [vmem:[%s1319_s1 + $0xb8] sm:$0xff]  ;;  %v134_v39 = vld [vmem:[%s1319_s1 + $0xc0] sm:$0xff] }
   0xa   :  { %v590_v38 = vpack.c.bf16 %v133_v37, %v132_v36  ;;  %v135_v40 = vld [vmem:[%s1319_s1 + $0xc8] sm:$0xff]  ;;  %v136_v42 = vld [vmem:[%s1319_s1 + $0xd0] sm:$0xff]  ;;  %v137_v43 = vld [vmem:[%s1319_s1 + $0xd8] sm:$0xff] }
   0xb   :  { %v593_v41 = vpack.c.bf16 %v135_v40, %v134_v39  ;;  %v596_v44 = vpack.c.bf16 %v137_v43, %v136_v42  ;;  %v138_v45 = vld [vmem:[%s1319_s1 + $0xe0] sm:$0xff]  ;;  %v139_v46 = vld [vmem:[%s1319_s1 + $0xe8] sm:$0xff]  ;;  %v140_v48 = vld [vmem:[%s1319_s1 + $0xf0] sm:$0xff] }
   0xc   :  { %564 = vmatpush1.bf16.msra.mxu0 %v563_v9  ;;  %622 = vmatpush1.bf16.msra.mxu1 %v563_v9  ;;  %v599_v47 = vpack.c.bf16 %v139_v46, %v138_v45  ;;  %v141_v49 = vld [vmem:[%s1319_s1 + $0xf8] sm:$0xff]  ;;  %v14_v51 = vld [vmem:[%s1320_s0] sm:$0xff]  ;;  %v16_v55 = vld [vmem:[%s1320_s0 + $0x10] sm:$0xff] }
   0xd   :  { %565 = vmatprep.subr.bf16.mxu0 %v637_v0  ;;  %607 = vmatprep.subr.bf16.mxu1 %v637_v0  ;;  %v602_v50 = vpack.c.bf16 %v141_v49, %v140_v48  ;;  %v62_v52 = vld [vmem:[%s1320_s0 + $0x180] sm:$0xff]  ;;  %v17_v53 = vld [vmem:[%s1320_s0 + $0x18] sm:$0xff]  ;;  %v64_v56 = vld [vmem:[%s1320_s0 + $0x190] sm:$0xff] }
   0xe   :  { %v65_v54 = vld [vmem:[%s1320_s0 + $0x198] sm:$0xff]  ;;  %v19_v57 = vld [vmem:[%s1320_s0 + $0x28] sm:$0xff]  ;;  %v18_v59 = vld [vmem:[%s1320_s0 + $0x20] sm:$0xff] }
   0xf   :  { %v67_v58 = vld [vmem:[%s1320_s0 + $0x1a8] sm:$0xff]  ;;  %v66_v60 = vld [vmem:[%s1320_s0 + $0x1a0] sm:$0xff]  ;;  %v21_v61 = vld [vmem:[%s1320_s0 + $0x38] sm:$0xff] }
  0x10   :  { %567 = vmatpush1.bf16.msra.mxu0 %v566_v13  ;;  %623 = vmatpush1.bf16.msra.mxu1 %v566_v13  ;;  %v69_v62 = vld [vmem:[%s1320_s0 + $0x1b8] sm:$0xff]  ;;  %v20_v63 = vld [vmem:[%s1320_s0 + $0x30] sm:$0xff]  ;;  %v23_v1 = vld [vmem:[%s1320_s0 + $0x48] sm:$0xff] }
  0x11   :  { %568 = vmatprep.subr.bf16.mxu0 %v637_v0  ;;  %608 = vmatprep.subr.bf16.mxu1 %v637_v0  ;;  %v71_v2 = vld [vmem:[%s1320_s0 + $0x1c8] sm:$0xff]  ;;  %v22_v3 = vld [vmem:[%s1320_s0 + $0x40] sm:$0xff]  ;;  %v25_v5 = vld [vmem:[%s1320_s0 + $0x58] sm:$0xff] }
  0x12   :  { %v70_v4 = vld [vmem:[%s1320_s0 + $0x1c0] sm:$0xff]  ;;  %v73_v6 = vld [vmem:[%s1320_s0 + $0x1d8] sm:$0xff]  ;;  %v24_v7 = vld [vmem:[%s1320_s0 + $0x50] sm:$0xff] }
  0x13   :  { %v72_v8 = vld [vmem:[%s1320_s0 + $0x1d0] sm:$0xff]  ;;  %v27_v9 = vld [vmem:[%s1320_s0 + $0x68] sm:$0xff]  ;;  %v26_v11 = vld [vmem:[%s1320_s0 + $0x60] sm:$0xff] }
  0x14   :  { %570 = vmatpush1.bf16.msra.mxu0 %v569_v17  ;;  %624 = vmatpush1.bf16.msra.mxu1 %v569_v17  ;;  %v75_v10 = vld [vmem:[%s1320_s0 + $0x1e8] sm:$0xff]  ;;  %v74_v12 = vld [vmem:[%s1320_s0 + $0x1e0] sm:$0xff]  ;;  %v29_v13 = vld [vmem:[%s1320_s0 + $0x78] sm:$0xff] }
  0x15   :  { %571 = vmatprep.subr.bf16.mxu0 %v637_v0  ;;  %609 = vmatprep.subr.bf16.mxu1 %v637_v0  ;;  %v77_v14 = vld [vmem:[%s1320_s0 + $0x1f8] sm:$0xff]  ;;  %v28_v15 = vld [vmem:[%s1320_s0 + $0x70] sm:$0xff]  ;;  %v31_v17 = vld [vmem:[%s1320_s0 + $0x88] sm:$0xff] }
  0x16   :  { %v76_v16 = vld [vmem:[%s1320_s0 + $0x1f0] sm:$0xff]  ;;  %v79_v18 = vld [vmem:[%s1320_s0 + $0x208] sm:$0xff]  ;;  %v30_v19 = vld [vmem:[%s1320_s0 + $0x80] sm:$0xff] }
  0x17   :  { %v33_v21 = vld [vmem:[%s1320_s0 + $0x98] sm:$0xff]  ;;  %v80_v24 = vld [vmem:[%s1320_s0 + $0x210] sm:$0xff]  ;;  %v35_v25 = vld [vmem:[%s1320_s0 + $0xa8] sm:$0xff] }
  0x18   :  { %573 = vmatpush1.bf16.msra.mxu0 %v572_v20  ;;  %625 = vmatpush1.bf16.msra.mxu1 %v572_v20  ;;  %v78_v20 = vld [vmem:[%s1320_s0 + $0x200] sm:$0xff]  ;;  %v81_v22 = vld [vmem:[%s1320_s0 + $0x218] sm:$0xff]  ;;  %v36_v31 = vld [vmem:[%s1320_s0 + $0xb0] sm:$0xff] }
  0x19   :  { %574 = vmatprep.subr.bf16.mxu0 %v637_v0  ;;  %610 = vmatprep.subr.bf16.mxu1 %v637_v0  ;;  %v34_v27 = vld [vmem:[%s1320_s0 + $0xa0] sm:$0xff]  ;;  %v85_v30 = vld [vmem:[%s1320_s0 + $0x238] sm:$0xff]  ;;  %v39_v33 = vld [vmem:[%s1320_s0 + $0xc8] sm:$0xff] }
  0x1a   :  { %v82_v28 = vld [vmem:[%s1320_s0 + $0x220] sm:$0xff]  ;;  %v87_v34 = vld [vmem:[%s1320_s0 + $0x248] sm:$0xff]  ;;  %v41_v37 = vld [vmem:[%s1320_s0 + $0xd8] sm:$0xff] }
  0x1b   :  { %v86_v36 = vld [vmem:[%s1320_s0 + $0x240] sm:$0xff]  ;;  %v40_v39 = vld [vmem:[%s1320_s0 + $0xd0] sm:$0xff]  ;;  %v91_v42 = vld [vmem:[%s1320_s0 + $0x268] sm:$0xff] }
  0x1c   :  { %576 = vmatpush1.bf16.msra.mxu0 %v575_v23  ;;  %626 = vmatpush1.bf16.msra.mxu1 %v575_v23  ;;  %v32_v23 = vld [vmem:[%s1320_s0 + $0x90] sm:$0xff]  ;;  %v42_v43 = vld [vmem:[%s1320_s0 + $0xe0] sm:$0xff]  ;;  %v45_v45 = vld [vmem:[%s1320_s0 + $0xf8] sm:$0xff] }
  0x1d   :  { %577 = vmatprep.subr.bf16.mxu0 %v637_v0  ;;  %611 = vmatprep.subr.bf16.mxu1 %v637_v0  ;;  %v88_v40 = vld [vmem:[%s1320_s0 + $0x250] sm:$0xff]  ;;  %v93_v46 = vld [vmem:[%s1320_s0 + $0x278] sm:$0xff]  ;;  %v47_v49 = vld [vmem:[%s1320_s0 + $0x108] sm:$0xff] }
  0x1e   :  { %v92_v48 = vld [vmem:[%s1320_s0 + $0x270] sm:$0xff] }
  0x20   :  { %579 = vmatpush1.bf16.msra.mxu0 %v578_v26  ;;  %627 = vmatpush1.bf16.msra.mxu1 %v578_v26  ;;  %v83_v26 = vld [vmem:[%s1320_s0 + $0x228] sm:$0xff] }
  0x21   :  { %580 = vmatprep.subr.bf16.mxu0 %v637_v0  ;;  %612 = vmatprep.subr.bf16.mxu1 %v637_v0 }
  0x24   :  { %582 = vmatpush1.bf16.msra.mxu0 %v581_v29  ;;  %628 = vmatpush1.bf16.msra.mxu1 %v581_v29  ;;  %v37_v29 = vld [vmem:[%s1320_s0 + $0xb8] sm:$0xff] }
  0x25   :  { %583 = vmatprep.subr.bf16.mxu0 %v637_v0  ;;  %613 = vmatprep.subr.bf16.mxu1 %v637_v0 }
  0x28   :  { %585 = vmatpush1.bf16.msra.mxu0 %v584_v32  ;;  %629 = vmatpush1.bf16.msra.mxu1 %v584_v32  ;;  %v84_v32 = vld [vmem:[%s1320_s0 + $0x230] sm:$0xff] }
  0x29   :  { %586 = vmatprep.subr.bf16.mxu0 %v637_v0  ;;  %614 = vmatprep.subr.bf16.mxu1 %v637_v0 }
  0x2c   :  { %588 = vmatpush1.bf16.msra.mxu0 %v587_v35  ;;  %630 = vmatpush1.bf16.msra.mxu1 %v587_v35  ;;  %v38_v35 = vld [vmem:[%s1320_s0 + $0xc0] sm:$0xff] }
  0x2d   :  { %589 = vmatprep.subr.bf16.mxu0 %v637_v0  ;;  %615 = vmatprep.subr.bf16.mxu1 %v637_v0 }
  0x30   :  { %591 = vmatpush1.bf16.msra.mxu0 %v590_v38  ;;  %631 = vmatpush1.bf16.msra.mxu1 %v590_v38  ;;  %v89_v38 = vld [vmem:[%s1320_s0 + $0x258] sm:$0xff] }
  0x31   :  { %592 = vmatprep.subr.bf16.mxu0 %v637_v0  ;;  %616 = vmatprep.subr.bf16.mxu1 %v637_v0 }
  0x34   :  { %594 = vmatpush1.bf16.msra.mxu0 %v593_v41  ;;  %632 = vmatpush1.bf16.msra.mxu1 %v593_v41  ;;  %v43_v41 = vld [vmem:[%s1320_s0 + $0xe8] sm:$0xff] }
  0x35   :  { %595 = vmatprep.subr.bf16.mxu0 %v637_v0  ;;  %617 = vmatprep.subr.bf16.mxu1 %v637_v0 }
  0x38   :  { %597 = vmatpush1.bf16.msra.mxu0 %v596_v44  ;;  %633 = vmatpush1.bf16.msra.mxu1 %v596_v44  ;;  %v90_v44 = vld [vmem:[%s1320_s0 + $0x260] sm:$0xff] }
  0x39   :  { %598 = vmatprep.subr.bf16.mxu0 %v637_v0  ;;  %618 = vmatprep.subr.bf16.mxu1 %v637_v0 }
  0x3c   :  { %600 = vmatpush1.bf16.msra.mxu0 %v599_v47  ;;  %634 = vmatpush1.bf16.msra.mxu1 %v599_v47  ;;  %v44_v47 = vld [vmem:[%s1320_s0 + $0xf0] sm:$0xff] }
  0x3d   :  { %601 = vmatprep.subr.bf16.mxu0 %v637_v0  ;;  %619 = vmatprep.subr.bf16.mxu1 %v637_v0  ;;  %v68_v0 = vld [vmem:[%s1320_s0 + $0x1b0] sm:$0xff] }
  0x40   :  { %603 = vmatpush1.bf16.msra.mxu0 %v602_v50  ;;  %635 = vmatpush1.bf16.msra.mxu1 %v602_v50  ;;  %v95_v50 = vld [vmem:[%s1320_s0 + $0x288] sm:$0xff] }
  0x43   :  { %214 = vmatmul.mubr.f32.vlgmr.msra.gmra.mrb[0].mxu0 %v14_v51  ;;  %334 = vmatmul.mubr.f32.vlgmr.msra.gmra.mrb[0].mxu1 %v62_v52  ;;  %v46_v51 = vld [vmem:[%s1320_s0 + $0x100] sm:$0xff] }
  0x44   :  { %218 = vmatprep.mubr.f32.mxu0 %v17_v53  ;;  %338 = vmatprep.mubr.f32.mxu1 %v65_v54  ;;  %v94_v52 = vld [vmem:[%s1320_s0 + $0x280] sm:$0xff]  ;;  %v49_v53 = vld [vmem:[%s1320_s0 + $0x118] sm:$0xff] }
  0x45   :  { %v97_v54 = vld [vmem:[%s1320_s0 + $0x298] sm:$0xff] }
  0x47   :  { %219 = vmatmul.mubr.f32.gmra.mrb[2].mxu0 %v16_v55  ;;  %339 = vmatmul.mubr.f32.gmra.mrb[2].mxu1 %v64_v56  ;;  %v48_v55 = vld [vmem:[%s1320_s0 + $0x110] sm:$0xff] }
  0x48   :  { %223 = vmatprep.mubr.f32.mxu0 %v19_v57  ;;  %343 = vmatprep.mubr.f32.mxu1 %v67_v58  ;;  %v96_v56 = vld [vmem:[%s1320_s0 + $0x290] sm:$0xff]  ;;  %v51_v57 = vld [vmem:[%s1320_s0 + $0x128] sm:$0xff] }
  0x49   :  { %v99_v58 = vld [vmem:[%s1320_s0 + $0x2a8] sm:$0xff] }
  0x4b   :  { %224 = vmatmul.mubr.f32.gmra.mrb[4].mxu0 %v18_v59  ;;  %344 = vmatmul.mubr.f32.gmra.mrb[4].mxu1 %v66_v60  ;;  %v50_v59 = vld [vmem:[%s1320_s0 + $0x120] sm:$0xff] }
  0x4c   :  { %228 = vmatprep.mubr.f32.mxu0 %v21_v61  ;;  %348 = vmatprep.mubr.f32.mxu1 %v69_v62  ;;  %v98_v60 = vld [vmem:[%s1320_s0 + $0x2a0] sm:$0xff]  ;;  %v53_v61 = vld [vmem:[%s1320_s0 + $0x138] sm:$0xff] }
  0x4d   :  { %v101_v62 = vld [vmem:[%s1320_s0 + $0x2b8] sm:$0xff] }
  0x4f   :  { %229 = vmatmul.mubr.f32.gmra.mrb[6].mxu0 %v20_v63  ;;  %349 = vmatmul.mubr.f32.gmra.mrb[6].mxu1 %v68_v0  ;;  %v52_v63 = vld [vmem:[%s1320_s0 + $0x130] sm:$0xff] }
  0x50   :  { %233 = vmatprep.mubr.f32.mxu0 %v23_v1  ;;  %353 = vmatprep.mubr.f32.mxu1 %v71_v2  ;;  %v100_v0 = vld [vmem:[%s1320_s0 + $0x2b0] sm:$0xff]  ;;  %v55_v1 = vld [vmem:[%s1320_s0 + $0x148] sm:$0xff] }
  0x51   :  { %v103_v2 = vld [vmem:[%s1320_s0 + $0x2c8] sm:$0xff] }
  0x53   :  { %234 = vmatmul.mubr.f32.gmra.mrb[8].mxu0 %v22_v3  ;;  %354 = vmatmul.mubr.f32.gmra.mrb[8].mxu1 %v70_v4  ;;  %v54_v3 = vld [vmem:[%s1320_s0 + $0x140] sm:$0xff] }
  0x54   :  { %238 = vmatprep.mubr.f32.mxu0 %v25_v5  ;;  %358 = vmatprep.mubr.f32.mxu1 %v73_v6  ;;  %v102_v4 = vld [vmem:[%s1320_s0 + $0x2c0] sm:$0xff]  ;;  %v57_v5 = vld [vmem:[%s1320_s0 + $0x158] sm:$0xff] }
  0x55   :  { %v105_v6 = vld [vmem:[%s1320_s0 + $0x2d8] sm:$0xff] }
  0x57   :  { %239 = vmatmul.mubr.f32.gmra.mrb[10].mxu0 %v24_v7  ;;  %359 = vmatmul.mubr.f32.gmra.mrb[10].mxu1 %v72_v8  ;;  %v56_v7 = vld [vmem:[%s1320_s0 + $0x150] sm:$0xff] }
  0x58   :  { %243 = vmatprep.mubr.f32.mxu0 %v27_v9  ;;  %363 = vmatprep.mubr.f32.mxu1 %v75_v10  ;;  %v104_v8 = vld [vmem:[%s1320_s0 + $0x2d0] sm:$0xff]  ;;  %v59_v9 = vld [vmem:[%s1320_s0 + $0x168] sm:$0xff] }
  0x59   :  { %v107_v10 = vld [vmem:[%s1320_s0 + $0x2e8] sm:$0xff] }
  0x5b   :  { %244 = vmatmul.mubr.f32.gmra.mrb[12].mxu0 %v26_v11  ;;  %364 = vmatmul.mubr.f32.gmra.mrb[12].mxu1 %v74_v12  ;;  %v58_v11 = vld [vmem:[%s1320_s0 + $0x160] sm:$0xff] }
  0x5c   :  { %248 = vmatprep.mubr.f32.mxu0 %v29_v13  ;;  %368 = vmatprep.mubr.f32.mxu1 %v77_v14  ;;  %v106_v12 = vld [vmem:[%s1320_s0 + $0x2e0] sm:$0xff]  ;;  %v61_v13 = vld [vmem:[%s1320_s0 + $0x178] sm:$0xff] }
  0x5d   :  { %v109_v14 = vld [vmem:[%s1320_s0 + $0x2f8] sm:$0xff] }
  0x5f   :  { %249 = vmatmul.mubr.f32.gmra.mrb[14].mxu0 %v28_v15  ;;  %369 = vmatmul.mubr.f32.gmra.mrb[14].mxu1 %v76_v16  ;;  %v60_v15 = vld [vmem:[%s1320_s0 + $0x170] sm:$0xff] }
  0x60   :  { %253 = vmatprep.mubr.f32.mxu0 %v31_v17  ;;  %373 = vmatprep.mubr.f32.mxu1 %v79_v18  ;;  %v108_v16 = vld [vmem:[%s1320_s0 + $0x2f0] sm:$0xff]  ;;  %v1077_v17 = vld [vmem:[%s1321_s2] ss:$0 sm:$0xff] }
  0x63   :  { %254 = vmatmul.mubr.f32.gmra.mrb[16].mxu0 %v30_v19  ;;  %374 = vmatmul.mubr.f32.gmra.mrb[16].mxu1 %v78_v20 }
  0x64   :  { %258 = vmatprep.mubr.f32.mxu0 %v33_v21  ;;  %378 = vmatprep.mubr.f32.mxu1 %v81_v22 }
  0x67   :  { %259 = vmatmul.mubr.f32.gmra.mrb[18].mxu0 %v32_v23  ;;  %379 = vmatmul.mubr.f32.gmra.mrb[18].mxu1 %v80_v24 }
  0x68   :  { %263 = vmatprep.mubr.f32.mxu0 %v35_v25  ;;  %383 = vmatprep.mubr.f32.mxu1 %v83_v26 }
  0x6b   :  { %264 = vmatmul.mubr.f32.gmra.mrb[20].mxu0 %v34_v27  ;;  %384 = vmatmul.mubr.f32.gmra.mrb[20].mxu1 %v82_v28 }
  0x6c   :  { %268 = vmatprep.mubr.f32.mxu0 %v37_v29  ;;  %388 = vmatprep.mubr.f32.mxu1 %v85_v30 }
  0x6f   :  { %269 = vmatmul.mubr.f32.gmra.mrb[22].mxu0 %v36_v31  ;;  %389 = vmatmul.mubr.f32.gmra.mrb[22].mxu1 %v84_v32 }
  0x70   :  { %273 = vmatprep.mubr.f32.mxu0 %v39_v33  ;;  %393 = vmatprep.mubr.f32.mxu1 %v87_v34 }
  0x73   :  { %274 = vmatmul.mubr.f32.gmra.mrb[24].mxu0 %v38_v35  ;;  %394 = vmatmul.mubr.f32.gmra.mrb[24].mxu1 %v86_v36 }
  0x74   :  { %278 = vmatprep.mubr.f32.mxu0 %v41_v37  ;;  %398 = vmatprep.mubr.f32.mxu1 %v89_v38 }
  0x77   :  { %279 = vmatmul.mubr.f32.gmra.mrb[26].mxu0 %v40_v39  ;;  %399 = vmatmul.mubr.f32.gmra.mrb[26].mxu1 %v88_v40 }
  0x78   :  { %283 = vmatprep.mubr.f32.mxu0 %v43_v41  ;;  %403 = vmatprep.mubr.f32.mxu1 %v91_v42 }
  0x7b   :  { %284 = vmatmul.mubr.f32.gmra.mrb[28].mxu0 %v42_v43  ;;  %404 = vmatmul.mubr.f32.gmra.mrb[28].mxu1 %v90_v44 }
  0x7c   :  { %288 = vmatprep.mubr.f32.mxu0 %v45_v45  ;;  %408 = vmatprep.mubr.f32.mxu1 %v93_v46 }
  0x7f   :  { %289 = vmatmul.mubr.f32.gmra.mrb[30].mxu0 %v44_v47  ;;  %409 = vmatmul.mubr.f32.gmra.mrb[30].mxu1 %v92_v48 }
  0x80   :  { %293 = vmatprep.mubr.f32.mxu0 %v47_v49  ;;  %413 = vmatprep.mubr.f32.mxu1 %v95_v50 }
  0x83   :  { %294 = vmatmul.mubr.f32.gmra.mrb[32].mxu0 %v46_v51  ;;  %414 = vmatmul.mubr.f32.gmra.mrb[32].mxu1 %v94_v52 }
  0x84   :  { %298 = vmatprep.mubr.f32.mxu0 %v49_v53  ;;  %418 = vmatprep.mubr.f32.mxu1 %v97_v54 }
  0x87   :  { %299 = vmatmul.mubr.f32.gmra.mrb[34].mxu0 %v48_v55  ;;  %419 = vmatmul.mubr.f32.gmra.mrb[34].mxu1 %v96_v56 }
  0x88   :  { %303 = vmatprep.mubr.f32.mxu0 %v51_v57  ;;  %423 = vmatprep.mubr.f32.mxu1 %v99_v58 }
  0x8b   :  { %304 = vmatmul.mubr.f32.gmra.mrb[36].mxu0 %v50_v59  ;;  %424 = vmatmul.mubr.f32.gmra.mrb[36].mxu1 %v98_v60 }
  0x8c   :  { %308 = vmatprep.mubr.f32.mxu0 %v53_v61  ;;  %428 = vmatprep.mubr.f32.mxu1 %v101_v62 }
  0x8f   :  { %309 = vmatmul.mubr.f32.gmra.mrb[38].mxu0 %v52_v63  ;;  %429 = vmatmul.mubr.f32.gmra.mrb[38].mxu1 %v100_v0 }
  0x90   :  { %313 = vmatprep.mubr.f32.mxu0 %v55_v1  ;;  %433 = vmatprep.mubr.f32.mxu1 %v103_v2 }
  0x93   :  { %314 = vmatmul.mubr.f32.gmra.mrb[40].mxu0 %v54_v3  ;;  %434 = vmatmul.mubr.f32.gmra.mrb[40].mxu1 %v102_v4 }
  0x94   :  { %318 = vmatprep.mubr.f32.mxu0 %v57_v5  ;;  %438 = vmatprep.mubr.f32.mxu1 %v105_v6 }
  0x97   :  { %319 = vmatmul.mubr.f32.gmra.mrb[42].mxu0 %v56_v7  ;;  %439 = vmatmul.mubr.f32.gmra.mrb[42].mxu1 %v104_v8 }
  0x98   :  { %323 = vmatprep.mubr.f32.mxu0 %v59_v9  ;;  %443 = vmatprep.mubr.f32.mxu1 %v107_v10 }
  0x9b   :  { %324 = vmatmul.mubr.f32.gmra.mrb[44].mxu0 %v58_v11  ;;  %444 = vmatmul.mubr.f32.gmra.mrb[44].mxu1 %v106_v12 }
  0x9c   :  { %328 = vmatprep.mubr.f32.mxu0 %v61_v13  ;;  %448 = vmatprep.mubr.f32.mxu1 %v109_v14 }
  0x9f   :  { %329 = vmatmul.mubr.f32.gmra.mrb[46].mxu0 %v60_v15  ;;  %449 = vmatmul.mubr.f32.gmra.mrb[46].mxu1 %v108_v16 }
 0x116   :  { %v215_v18 = vpop.f32.mrb[0].mxu0  ;;  %v335_v19 = vpop.f32.mrb[0].mxu1 }
 0x117   :  { %v216_v20 = vadd.f32 %v1077_v17, %v215_v18  ;;  %v336_v21 = vadd.f32 %v1077_v17, %v335_v19  ;;  %v217_v22 = vpop.f32.mrb[1].mxu0  ;;  %v337_v23 = vpop.f32.mrb[1].mxu1 }
 0x119   :  { %v454_v24 = vmax.f32 %v216_v20, 0.0  ;;  %v478_v25 = vmax.f32 %v336_v21, 0.0 }
 0x11a   :  { %v220_v26 = vpop.f32.mrb[2].mxu0  ;;  %v340_v27 = vpop.f32.mrb[2].mxu1 }
 0x11b   :  { %503 = vst.msk [vmem:[%s1322_s3] sm:$0xff] %vm502_vm0, %v454_v24  ;;  %527 = vst.msk [vmem:[%s1322_s3 + $0xc0] sm:$0xff] %vm502_vm0, %v478_v25  ;;  %v221_v28 = vadd.f32 %v1077_v17, %v220_v26  ;;  %v341_v29 = vadd.f32 %v1077_v17, %v340_v27  ;;  %v222_v30 = vpop.f32.mrb[3].mxu0  ;;  %v342_v31 = vpop.f32.mrb[3].mxu1 }
 0x11d   :  { %v455_v32 = vmax.f32 %v221_v28, 0.0  ;;  %v479_v33 = vmax.f32 %v341_v29, 0.0 }
 0x11e   :  { %v225_v34 = vpop.f32.mrb[4].mxu0  ;;  %v345_v35 = vpop.f32.mrb[4].mxu1 }
 0x11f   :  { %504 = vst.msk [vmem:[%s1322_s3 + $0x8] sm:$0xff] %vm502_vm0, %v455_v32  ;;  %528 = vst.msk [vmem:[%s1322_s3 + $0xc8] sm:$0xff] %vm502_vm0, %v479_v33  ;;  %v226_v36 = vadd.f32 %v1077_v17, %v225_v34  ;;  %v346_v37 = vadd.f32 %v1077_v17, %v345_v35  ;;  %v227_v38 = vpop.f32.mrb[5].mxu0  ;;  %v347_v39 = vpop.f32.mrb[5].mxu1 }
 0x121   :  { %v456_v40 = vmax.f32 %v226_v36, 0.0  ;;  %v480_v41 = vmax.f32 %v346_v37, 0.0 }
 0x122   :  { %v230_v42 = vpop.f32.mrb[6].mxu0  ;;  %v350_v43 = vpop.f32.mrb[6].mxu1 }
 0x123   :  { %505 = vst.msk [vmem:[%s1322_s3 + $0x10] sm:$0xff] %vm502_vm0, %v456_v40  ;;  %529 = vst.msk [vmem:[%s1322_s3 + $0xd0] sm:$0xff] %vm502_vm0, %v480_v41  ;;  %v231_v44 = vadd.f32 %v1077_v17, %v230_v42  ;;  %v351_v45 = vadd.f32 %v1077_v17, %v350_v43  ;;  %v232_v46 = vpop.f32.mrb[7].mxu0  ;;  %v352_v47 = vpop.f32.mrb[7].mxu1 }
 0x125   :  { %v457_v48 = vmax.f32 %v231_v44, 0.0  ;;  %v481_v49 = vmax.f32 %v351_v45, 0.0 }
 0x126   :  { %v235_v50 = vpop.f32.mrb[8].mxu0  ;;  %v355_v51 = vpop.f32.mrb[8].mxu1 }
 0x127   :  { %506 = vst.msk [vmem:[%s1322_s3 + $0x18] sm:$0xff] %vm502_vm0, %v457_v48  ;;  %530 = vst.msk [vmem:[%s1322_s3 + $0xd8] sm:$0xff] %vm502_vm0, %v481_v49  ;;  %v236_v52 = vadd.f32 %v1077_v17, %v235_v50  ;;  %v356_v53 = vadd.f32 %v1077_v17, %v355_v51  ;;  %v237_v54 = vpop.f32.mrb[9].mxu0  ;;  %v357_v55 = vpop.f32.mrb[9].mxu1 }
 0x129   :  { %v458_v56 = vmax.f32 %v236_v52, 0.0  ;;  %v482_v57 = vmax.f32 %v356_v53, 0.0 }
 0x12a   :  { %v240_v58 = vpop.f32.mrb[10].mxu0  ;;  %v360_v59 = vpop.f32.mrb[10].mxu1 }
 0x12b   :  { %507 = vst.msk [vmem:[%s1322_s3 + $0x20] sm:$0xff] %vm502_vm0, %v458_v56  ;;  %531 = vst.msk [vmem:[%s1322_s3 + $0xe0] sm:$0xff] %vm502_vm0, %v482_v57  ;;  %v241_v60 = vadd.f32 %v1077_v17, %v240_v58  ;;  %v361_v61 = vadd.f32 %v1077_v17, %v360_v59  ;;  %v242_v62 = vpop.f32.mrb[11].mxu0  ;;  %v362_v63 = vpop.f32.mrb[11].mxu1 }
 0x12d   :  { %v459_v0 = vmax.f32 %v241_v60, 0.0  ;;  %v483_v1 = vmax.f32 %v361_v61, 0.0 }
 0x12e   :  { %v245_v2 = vpop.f32.mrb[12].mxu0  ;;  %v365_v3 = vpop.f32.mrb[12].mxu1 }
 0x12f   :  { %508 = vst.msk [vmem:[%s1322_s3 + $0x28] sm:$0xff] %vm502_vm0, %v459_v0  ;;  %532 = vst.msk [vmem:[%s1322_s3 + $0xe8] sm:$0xff] %vm502_vm0, %v483_v1  ;;  %v246_v4 = vadd.f32 %v1077_v17, %v245_v2  ;;  %v366_v5 = vadd.f32 %v1077_v17, %v365_v3  ;;  %v247_v6 = vpop.f32.mrb[13].mxu0  ;;  %v367_v7 = vpop.f32.mrb[13].mxu1 }
 0x131   :  { %v460_v8 = vmax.f32 %v246_v4, 0.0  ;;  %v484_v9 = vmax.f32 %v366_v5, 0.0 }
 0x132   :  { %v250_v10 = vpop.f32.mrb[14].mxu0  ;;  %v370_v11 = vpop.f32.mrb[14].mxu1 }
 0x133   :  { %509 = vst.msk [vmem:[%s1322_s3 + $0x30] sm:$0xff] %vm502_vm0, %v460_v8  ;;  %533 = vst.msk [vmem:[%s1322_s3 + $0xf0] sm:$0xff] %vm502_vm0, %v484_v9  ;;  %v251_v12 = vadd.f32 %v1077_v17, %v250_v10  ;;  %v371_v13 = vadd.f32 %v1077_v17, %v370_v11  ;;  %v252_v14 = vpop.f32.mrb[15].mxu0  ;;  %v372_v15 = vpop.f32.mrb[15].mxu1 }
 0x135   :  { %v461_v16 = vmax.f32 %v251_v12, 0.0  ;;  %v485_v18 = vmax.f32 %v371_v13, 0.0 }
 0x136   :  { %v255_v19 = vpop.f32.mrb[16].mxu0  ;;  %v375_v20 = vpop.f32.mrb[16].mxu1 }
 0x137   :  { %510 = vst.msk [vmem:[%s1322_s3 + $0x38] sm:$0xff] %vm502_vm0, %v461_v16  ;;  %534 = vst.msk [vmem:[%s1322_s3 + $0xf8] sm:$0xff] %vm502_vm0, %v485_v18  ;;  %v256_v21 = vadd.f32 %v1077_v17, %v255_v19  ;;  %v376_v22 = vadd.f32 %v1077_v17, %v375_v20  ;;  %v257_v23 = vpop.f32.mrb[17].mxu0  ;;  %v377_v24 = vpop.f32.mrb[17].mxu1 }
 0x139   :  { %v462_v25 = vmax.f32 %v256_v21, 0.0  ;;  %v486_v26 = vmax.f32 %v376_v22, 0.0 }
 0x13a   :  { %v260_v27 = vpop.f32.mrb[18].mxu0  ;;  %v380_v28 = vpop.f32.mrb[18].mxu1 }
 0x13b   :  { %511 = vst.msk [vmem:[%s1322_s3 + $0x40] sm:$0xff] %vm502_vm0, %v462_v25  ;;  %535 = vst.msk [vmem:[%s1322_s3 + $0x100] sm:$0xff] %vm502_vm0, %v486_v26  ;;  %v261_v29 = vadd.f32 %v1077_v17, %v260_v27  ;;  %v381_v30 = vadd.f32 %v1077_v17, %v380_v28  ;;  %v262_v31 = vpop.f32.mrb[19].mxu0  ;;  %v382_v32 = vpop.f32.mrb[19].mxu1 }
 0x13d   :  { %v463_v33 = vmax.f32 %v261_v29, 0.0  ;;  %v487_v34 = vmax.f32 %v381_v30, 0.0 }
 0x13e   :  { %v265_v35 = vpop.f32.mrb[20].mxu0  ;;  %v385_v36 = vpop.f32.mrb[20].mxu1 }
 0x13f   :  { %512 = vst.msk [vmem:[%s1322_s3 + $0x48] sm:$0xff] %vm502_vm0, %v463_v33  ;;  %536 = vst.msk [vmem:[%s1322_s3 + $0x108] sm:$0xff] %vm502_vm0, %v487_v34  ;;  %v266_v37 = vadd.f32 %v1077_v17, %v265_v35  ;;  %v386_v38 = vadd.f32 %v1077_v17, %v385_v36  ;;  %v267_v39 = vpop.f32.mrb[21].mxu0  ;;  %v387_v40 = vpop.f32.mrb[21].mxu1 }
 0x141   :  { %v464_v41 = vmax.f32 %v266_v37, 0.0  ;;  %v488_v42 = vmax.f32 %v386_v38, 0.0 }
 0x142   :  { %v270_v43 = vpop.f32.mrb[22].mxu0  ;;  %v390_v44 = vpop.f32.mrb[22].mxu1 }
 0x143   :  { %513 = vst.msk [vmem:[%s1322_s3 + $0x50] sm:$0xff] %vm502_vm0, %v464_v41  ;;  %537 = vst.msk [vmem:[%s1322_s3 + $0x110] sm:$0xff] %vm502_vm0, %v488_v42  ;;  %v271_v45 = vadd.f32 %v1077_v17, %v270_v43  ;;  %v391_v46 = vadd.f32 %v1077_v17, %v390_v44  ;;  %v272_v47 = vpop.f32.mrb[23].mxu0  ;;  %v392_v48 = vpop.f32.mrb[23].mxu1 }
 0x145   :  { %v465_v49 = vmax.f32 %v271_v45, 0.0  ;;  %v489_v50 = vmax.f32 %v391_v46, 0.0 }
 0x146   :  { %v275_v51 = vpop.f32.mrb[24].mxu0  ;;  %v395_v52 = vpop.f32.mrb[24].mxu1 }
 0x147   :  { %514 = vst.msk [vmem:[%s1322_s3 + $0x58] sm:$0xff] %vm502_vm0, %v465_v49  ;;  %538 = vst.msk [vmem:[%s1322_s3 + $0x118] sm:$0xff] %vm502_vm0, %v489_v50  ;;  %v276_v53 = vadd.f32 %v1077_v17, %v275_v51  ;;  %v396_v54 = vadd.f32 %v1077_v17, %v395_v52  ;;  %v277_v55 = vpop.f32.mrb[25].mxu0  ;;  %v397_v56 = vpop.f32.mrb[25].mxu1 }
 0x149   :  { %v466_v57 = vmax.f32 %v276_v53, 0.0  ;;  %v490_v58 = vmax.f32 %v396_v54, 0.0 }
 0x14a   :  { %v280_v59 = vpop.f32.mrb[26].mxu0  ;;  %v400_v60 = vpop.f32.mrb[26].mxu1 }
 0x14b   :  { %515 = vst.msk [vmem:[%s1322_s3 + $0x60] sm:$0xff] %vm502_vm0, %v466_v57  ;;  %539 = vst.msk [vmem:[%s1322_s3 + $0x120] sm:$0xff] %vm502_vm0, %v490_v58  ;;  %v281_v61 = vadd.f32 %v1077_v17, %v280_v59  ;;  %v401_v62 = vadd.f32 %v1077_v17, %v400_v60  ;;  %v282_v63 = vpop.f32.mrb[27].mxu0  ;;  %v402_v0 = vpop.f32.mrb[27].mxu1 }
 0x14d   :  { %v467_v1 = vmax.f32 %v281_v61, 0.0  ;;  %v491_v2 = vmax.f32 %v401_v62, 0.0 }
 0x14e   :  { %v285_v3 = vpop.f32.mrb[28].mxu0  ;;  %v405_v4 = vpop.f32.mrb[28].mxu1 }
 0x14f   :  { %516 = vst.msk [vmem:[%s1322_s3 + $0x68] sm:$0xff] %vm502_vm0, %v467_v1  ;;  %540 = vst.msk [vmem:[%s1322_s3 + $0x128] sm:$0xff] %vm502_vm0, %v491_v2  ;;  %v286_v5 = vadd.f32 %v1077_v17, %v285_v3  ;;  %v406_v6 = vadd.f32 %v1077_v17, %v405_v4  ;;  %v287_v7 = vpop.f32.mrb[29].mxu0  ;;  %v407_v8 = vpop.f32.mrb[29].mxu1 }
 0x151   :  { %v468_v9 = vmax.f32 %v286_v5, 0.0  ;;  %v492_v10 = vmax.f32 %v406_v6, 0.0 }
 0x152   :  { %v290_v11 = vpop.f32.mrb[30].mxu0  ;;  %v410_v12 = vpop.f32.mrb[30].mxu1 }
 0x153   :  { %517 = vst.msk [vmem:[%s1322_s3 + $0x70] sm:$0xff] %vm502_vm0, %v468_v9  ;;  %541 = vst.msk [vmem:[%s1322_s3 + $0x130] sm:$0xff] %vm502_vm0, %v492_v10  ;;  %v291_v13 = vadd.f32 %v1077_v17, %v290_v11  ;;  %v411_v14 = vadd.f32 %v1077_v17, %v410_v12  ;;  %v292_v15 = vpop.f32.mrb[31].mxu0  ;;  %v412_v16 = vpop.f32.mrb[31].mxu1 }
 0x155   :  { %v469_v18 = vmax.f32 %v291_v13, 0.0  ;;  %v493_v19 = vmax.f32 %v411_v14, 0.0 }
 0x156   :  { %v295_v20 = vpop.f32.mrb[32].mxu0  ;;  %v415_v21 = vpop.f32.mrb[32].mxu1 }
 0x157   :  { %518 = vst.msk [vmem:[%s1322_s3 + $0x78] sm:$0xff] %vm502_vm0, %v469_v18  ;;  %542 = vst.msk [vmem:[%s1322_s3 + $0x138] sm:$0xff] %vm502_vm0, %v493_v19  ;;  %v296_v22 = vadd.f32 %v1077_v17, %v295_v20  ;;  %v416_v23 = vadd.f32 %v1077_v17, %v415_v21  ;;  %v297_v24 = vpop.f32.mrb[33].mxu0  ;;  %v417_v25 = vpop.f32.mrb[33].mxu1 }
 0x159   :  { %v470_v26 = vmax.f32 %v296_v22, 0.0  ;;  %v494_v27 = vmax.f32 %v416_v23, 0.0 }
 0x15a   :  { %v300_v28 = vpop.f32.mrb[34].mxu0  ;;  %v420_v29 = vpop.f32.mrb[34].mxu1 }
 0x15b   :  { %519 = vst.msk [vmem:[%s1322_s3 + $0x80] sm:$0xff] %vm502_vm0, %v470_v26  ;;  %543 = vst.msk [vmem:[%s1322_s3 + $0x140] sm:$0xff] %vm502_vm0, %v494_v27  ;;  %v301_v30 = vadd.f32 %v1077_v17, %v300_v28  ;;  %v421_v31 = vadd.f32 %v1077_v17, %v420_v29  ;;  %v302_v32 = vpop.f32.mrb[35].mxu0  ;;  %v422_v33 = vpop.f32.mrb[35].mxu1 }
 0x15d   :  { %v471_v34 = vmax.f32 %v301_v30, 0.0  ;;  %v495_v35 = vmax.f32 %v421_v31, 0.0 }
 0x15e   :  { %v305_v36 = vpop.f32.mrb[36].mxu0  ;;  %v425_v37 = vpop.f32.mrb[36].mxu1 }
 0x15f   :  { %520 = vst.msk [vmem:[%s1322_s3 + $0x88] sm:$0xff] %vm502_vm0, %v471_v34  ;;  %544 = vst.msk [vmem:[%s1322_s3 + $0x148] sm:$0xff] %vm502_vm0, %v495_v35  ;;  %v306_v38 = vadd.f32 %v1077_v17, %v305_v36  ;;  %v426_v39 = vadd.f32 %v1077_v17, %v425_v37  ;;  %v307_v40 = vpop.f32.mrb[37].mxu0  ;;  %v427_v41 = vpop.f32.mrb[37].mxu1 }
 0x161   :  { %v472_v42 = vmax.f32 %v306_v38, 0.0  ;;  %v496_v43 = vmax.f32 %v426_v39, 0.0 }
 0x162   :  { %v310_v44 = vpop.f32.mrb[38].mxu0  ;;  %v430_v45 = vpop.f32.mrb[38].mxu1 }
 0x163   :  { %521 = vst.msk [vmem:[%s1322_s3 + $0x90] sm:$0xff] %vm502_vm0, %v472_v42  ;;  %545 = vst.msk [vmem:[%s1322_s3 + $0x150] sm:$0xff] %vm502_vm0, %v496_v43  ;;  %v311_v46 = vadd.f32 %v1077_v17, %v310_v44  ;;  %v431_v47 = vadd.f32 %v1077_v17, %v430_v45  ;;  %v312_v48 = vpop.f32.mrb[39].mxu0  ;;  %v432_v49 = vpop.f32.mrb[39].mxu1 }
 0x165   :  { %v473_v50 = vmax.f32 %v311_v46, 0.0  ;;  %v497_v51 = vmax.f32 %v431_v47, 0.0 }
 0x166   :  { %v315_v52 = vpop.f32.mrb[40].mxu0  ;;  %v435_v53 = vpop.f32.mrb[40].mxu1 }
 0x167   :  { %522 = vst.msk [vmem:[%s1322_s3 + $0x98] sm:$0xff] %vm502_vm0, %v473_v50  ;;  %546 = vst.msk [vmem:[%s1322_s3 + $0x158] sm:$0xff] %vm502_vm0, %v497_v51  ;;  %v316_v54 = vadd.f32 %v1077_v17, %v315_v52  ;;  %v436_v55 = vadd.f32 %v1077_v17, %v435_v53  ;;  %v317_v56 = vpop.f32.mrb[41].mxu0  ;;  %v437_v57 = vpop.f32.mrb[41].mxu1 }
 0x169   :  { %v474_v58 = vmax.f32 %v316_v54, 0.0  ;;  %v498_v59 = vmax.f32 %v436_v55, 0.0 }
 0x16a   :  { %v320_v60 = vpop.f32.mrb[42].mxu0  ;;  %v440_v61 = vpop.f32.mrb[42].mxu1 }
 0x16b   :  { %523 = vst.msk [vmem:[%s1322_s3 + $0xa0] sm:$0xff] %vm502_vm0, %v474_v58  ;;  %547 = vst.msk [vmem:[%s1322_s3 + $0x160] sm:$0xff] %vm502_vm0, %v498_v59  ;;  %v321_v62 = vadd.f32 %v1077_v17, %v320_v60  ;;  %v441_v63 = vadd.f32 %v1077_v17, %v440_v61  ;;  %v322_v0 = vpop.f32.mrb[43].mxu0  ;;  %v442_v1 = vpop.f32.mrb[43].mxu1 }
 0x16d   :  { %v475_v2 = vmax.f32 %v321_v62, 0.0  ;;  %v499_v3 = vmax.f32 %v441_v63, 0.0 }
 0x16e   :  { %v325_v4 = vpop.f32.mrb[44].mxu0  ;;  %v445_v5 = vpop.f32.mrb[44].mxu1 }
 0x16f   :  { %524 = vst.msk [vmem:[%s1322_s3 + $0xa8] sm:$0xff] %vm502_vm0, %v475_v2  ;;  %548 = vst.msk [vmem:[%s1322_s3 + $0x168] sm:$0xff] %vm502_vm0, %v499_v3  ;;  %v326_v6 = vadd.f32 %v1077_v17, %v325_v4  ;;  %v446_v7 = vadd.f32 %v1077_v17, %v445_v5  ;;  %v327_v8 = vpop.f32.mrb[45].mxu0  ;;  %v447_v9 = vpop.f32.mrb[45].mxu1 }
 0x171   :  { %v476_v10 = vmax.f32 %v326_v6, 0.0  ;;  %v500_v11 = vmax.f32 %v446_v7, 0.0 }
 0x172   :  { %v330_v12 = vpop.f32.mrb[46].mxu0  ;;  %v450_v13 = vpop.f32.mrb[46].mxu1 }
 0x173   :  { %525 = vst.msk [vmem:[%s1322_s3 + $0xb0] sm:$0xff] %vm502_vm0, %v476_v10  ;;  %549 = vst.msk [vmem:[%s1322_s3 + $0x170] sm:$0xff] %vm502_vm0, %v500_v11  ;;  %v331_v14 = vadd.f32 %v1077_v17, %v330_v12  ;;  %v451_v15 = vadd.f32 %v1077_v17, %v450_v13  ;;  %v332_v16 = vpop.f32.mrb[47].mxu0  ;;  %v452_v18 = vpop.f32.mrb[47].mxu1 }
 0x175   :  { %v477_v19 = vmax.f32 %v331_v14, 0.0  ;;  %v501_v20 = vmax.f32 %v451_v15, 0.0 }
 0x177   :  { %526 = vst.msk [vmem:[%s1322_s3 + $0xb8] sm:$0xff] %vm502_vm0, %v477_v19  ;;  %550 = vst.msk [vmem:[%s1322_s3 + $0x178] sm:$0xff] %vm502_vm0, %v501_v20 }

// kernel: trpo_critic_cnn.5
= control target key start
LH: loop header
LB: loop body
LE: loop exit
PB: predicated region body
PF: predicated region fallthrough
CT: control target
= control target key end

     0   :  { %vm350_vm0 = vcmask 523264   ;;  %s917_s1 = inlined_call_operand.vmem [shape: f32[512,64], index: 1, kind: input, shape index: {}]   ;;  %s918_s0 = inlined_call_operand.vmem [shape: f32[72,512], index: 0, kind: input, shape index: {}]   ;;  %s919_s2 = inlined_call_operand.vmem [shape: f32[1,64], index: 2, kind: input, shape index: {}]   ;;  %s920_s3 = inlined_call_operand.vmem [shape: f32[72,64], index: 3, kind: output, shape index: {}]  }
   0x1   :  { %v66_v0 = vld [vmem:[%s917_s1 + $0x80] sm:$0xff]  ;;  %v67_v1 = vld [vmem:[%s917_s1 + $0x88] sm:$0xff]  ;;  %v68_v11 = vld [vmem:[%s917_s1 + $0x90] sm:$0xff] }
   0x2   :  { %v50_v2 = vld [vmem:[%s917_s1] sm:$0xff]  ;;  %v483_v3 = vpack.c.bf16 %v67_v1, %v66_v0  ;;  %v51_v4 = vld [vmem:[%s917_s1 + $0x8] sm:$0xff]  ;;  %v69_v13 = vld [vmem:[%s917_s1 + $0x98] sm:$0xff] }
   0x3   :  { %v98_v5 = vld [vmem:[%s917_s1 + $0x180] sm:$0xff]  ;;  %v99_v6 = vld [vmem:[%s917_s1 + $0x188] sm:$0xff]  ;;  %v485_v7 = vpack.c.bf16 %v51_v4, %v50_v2  ;;  %v52_v14 = vld [vmem:[%s917_s1 + $0x10] sm:$0xff]  ;;  %v487_v16 = vpack.c.bf16 %v69_v13, %v68_v11 }
   0x4   :  { %v515_v8 = vpack.c.bf16 %v99_v6, %v98_v5  ;;  %v82_v9 = vld [vmem:[%s917_s1 + $0x100] sm:$0xff]  ;;  %v83_v10 = vld [vmem:[%s917_s1 + $0x108] sm:$0xff]  ;;  %484 = vmatprep.subr.bf16.mxu0 %v483_v3  ;;  %v53_v15 = vld [vmem:[%s917_s1 + $0x18] sm:$0xff] }
   0x5   :  { %v517_v12 = vpack.c.bf16 %v83_v10, %v82_v9  ;;  %486 = vmatpush3.bf16.msra.mxu0 %v485_v7  ;;  %v489_v17 = vpack.c.bf16 %v53_v15, %v52_v14  ;;  %v100_v18 = vld [vmem:[%s917_s1 + $0x190] sm:$0xff]  ;;  %v101_v19 = vld [vmem:[%s917_s1 + $0x198] sm:$0xff]  ;;  %v70_v23 = vld [vmem:[%s917_s1 + $0xa0] sm:$0xff] }
   0x6   :  { %516 = vmatprep.subr.bf16.mxu1 %v515_v8  ;;  %v84_v20 = vld [vmem:[%s917_s1 + $0x110] sm:$0xff]  ;;  %v519_v21 = vpack.c.bf16 %v101_v19, %v100_v18  ;;  %v85_v22 = vld [vmem:[%s917_s1 + $0x118] sm:$0xff]  ;;  %v71_v24 = vld [vmem:[%s917_s1 + $0xa8] sm:$0xff]  ;;  %488 = vmatprep.subr.bf16.mxu0 %v487_v16 }
   0x7   :  { %518 = vmatpush3.bf16.msra.mxu1 %v517_v12  ;;  %v521_v25 = vpack.c.bf16 %v85_v22, %v84_v20  ;;  %v491_v26 = vpack.c.bf16 %v71_v24, %v70_v23  ;;  %v54_v27 = vld [vmem:[%s917_s1 + $0x20] sm:$0xff]  ;;  %v55_v28 = vld [vmem:[%s917_s1 + $0x28] sm:$0xff]  ;;  %v72_v35 = vld [vmem:[%s917_s1 + $0xb0] sm:$0xff] }
   0x8   :  { %v102_v29 = vld [vmem:[%s917_s1 + $0x1a0] sm:$0xff]  ;;  %520 = vmatprep.subr.bf16.mxu1 %v519_v21  ;;  %v103_v30 = vld [vmem:[%s917_s1 + $0x1a8] sm:$0xff]  ;;  %v493_v33 = vpack.c.bf16 %v55_v28, %v54_v27  ;;  %v73_v36 = vld [vmem:[%s917_s1 + $0xb8] sm:$0xff] }
   0x9   :  { %v86_v31 = vld [vmem:[%s917_s1 + $0x120] sm:$0xff]  ;;  %v87_v32 = vld [vmem:[%s917_s1 + $0x128] sm:$0xff]  ;;  %490 = vmatpush3.bf16.msra.mxu0 %v489_v17  ;;  %v523_v34 = vpack.c.bf16 %v103_v30, %v102_v29  ;;  %v56_v37 = vld [vmem:[%s917_s1 + $0x30] sm:$0xff]  ;;  %v495_v39 = vpack.c.bf16 %v73_v36, %v72_v35 }
   0xa   :  { %492 = vmatprep.subr.bf16.mxu0 %v491_v26  ;;  %v525_v38 = vpack.c.bf16 %v87_v32, %v86_v31  ;;  %v57_v40 = vld [vmem:[%s917_s1 + $0x38] sm:$0xff]  ;;  %v104_v41 = vld [vmem:[%s917_s1 + $0x1b0] sm:$0xff]  ;;  %v74_v46 = vld [vmem:[%s917_s1 + $0xc0] sm:$0xff] }
   0xb   :  { %522 = vmatpush3.bf16.msra.mxu1 %v521_v25  ;;  %v105_v42 = vld [vmem:[%s917_s1 + $0x1b8] sm:$0xff]  ;;  %v88_v44 = vld [vmem:[%s917_s1 + $0x130] sm:$0xff]  ;;  %v75_v47 = vld [vmem:[%s917_s1 + $0xc8] sm:$0xff]  ;;  %v497_v48 = vpack.c.bf16 %v57_v40, %v56_v37 }
   0xc   :  { %524 = vmatprep.subr.bf16.mxu1 %v523_v34  ;;  %v527_v43 = vpack.c.bf16 %v105_v42, %v104_v41  ;;  %v89_v45 = vld [vmem:[%s917_s1 + $0x138] sm:$0xff]  ;;  %v106_v49 = vld [vmem:[%s917_s1 + $0x1c0] sm:$0xff]  ;;  %v107_v50 = vld [vmem:[%s917_s1 + $0x1c8] sm:$0xff]  ;;  %v499_v52 = vpack.c.bf16 %v75_v47, %v74_v46 }
   0xd   :  { %494 = vmatpush3.bf16.msra.mxu0 %v493_v33  ;;  %v529_v51 = vpack.c.bf16 %v89_v45, %v88_v44  ;;  %v58_v53 = vld [vmem:[%s917_s1 + $0x40] sm:$0xff]  ;;  %v59_v54 = vld [vmem:[%s917_s1 + $0x48] sm:$0xff]  ;;  %v531_v56 = vpack.c.bf16 %v107_v50, %v106_v49  ;;  %v76_v58 = vld [vmem:[%s917_s1 + $0xd0] sm:$0xff] }
   0xe   :  { %496 = vmatprep.subr.bf16.mxu0 %v495_v39  ;;  %v90_v55 = vld [vmem:[%s917_s1 + $0x140] sm:$0xff]  ;;  %v91_v57 = vld [vmem:[%s917_s1 + $0x148] sm:$0xff]  ;;  %v77_v59 = vld [vmem:[%s917_s1 + $0xd8] sm:$0xff]  ;;  %v501_v62 = vpack.c.bf16 %v59_v54, %v58_v53 }
   0xf   :  { %526 = vmatpush3.bf16.msra.mxu1 %v525_v38  ;;  %v108_v60 = vld [vmem:[%s917_s1 + $0x1d0] sm:$0xff]  ;;  %v109_v61 = vld [vmem:[%s917_s1 + $0x1d8] sm:$0xff]  ;;  %v533_v63 = vpack.c.bf16 %v91_v57, %v90_v55  ;;  %v503_v0 = vpack.c.bf16 %v77_v59, %v76_v58  ;;  %v78_v6 = vld [vmem:[%s917_s1 + $0xe0] sm:$0xff] }
  0x10   :  { %528 = vmatprep.subr.bf16.mxu1 %v527_v43  ;;  %v60_v1 = vld [vmem:[%s917_s1 + $0x50] sm:$0xff]  ;;  %v61_v2 = vld [vmem:[%s917_s1 + $0x58] sm:$0xff]  ;;  %v535_v4 = vpack.c.bf16 %v109_v61, %v108_v60  ;;  %v79_v7 = vld [vmem:[%s917_s1 + $0xe8] sm:$0xff] }
  0x11   :  { %498 = vmatpush3.bf16.msra.mxu0 %v497_v48  ;;  %v92_v3 = vld [vmem:[%s917_s1 + $0x150] sm:$0xff]  ;;  %v93_v5 = vld [vmem:[%s917_s1 + $0x158] sm:$0xff]  ;;  %v110_v8 = vld [vmem:[%s917_s1 + $0x1e0] sm:$0xff]  ;;  %v505_v10 = vpack.c.bf16 %v61_v2, %v60_v1  ;;  %v507_v14 = vpack.c.bf16 %v79_v7, %v78_v6 }
  0x12   :  { %500 = vmatprep.subr.bf16.mxu0 %v499_v52  ;;  %v111_v9 = vld [vmem:[%s917_s1 + $0x1e8] sm:$0xff]  ;;  %v62_v11 = vld [vmem:[%s917_s1 + $0x60] sm:$0xff]  ;;  %v537_v13 = vpack.c.bf16 %v93_v5, %v92_v3  ;;  %v80_v19 = vld [vmem:[%s917_s1 + $0xf0] sm:$0xff] }
  0x13   :  { %530 = vmatpush3.bf16.msra.mxu1 %v529_v51  ;;  %v63_v12 = vld [vmem:[%s917_s1 + $0x68] sm:$0xff]  ;;  %v94_v15 = vld [vmem:[%s917_s1 + $0x160] sm:$0xff]  ;;  %v539_v18 = vpack.c.bf16 %v111_v9, %v110_v8  ;;  %v81_v20 = vld [vmem:[%s917_s1 + $0xf8] sm:$0xff] }
  0x14   :  { %532 = vmatprep.subr.bf16.mxu1 %v531_v56  ;;  %v95_v16 = vld [vmem:[%s917_s1 + $0x168] sm:$0xff]  ;;  %v17_v21 = vld [vmem:[%s918_s0 + $0x18] sm:$0xff]  ;;  %v112_v22 = vld [vmem:[%s917_s1 + $0x1f0] sm:$0xff]  ;;  %v509_v24 = vpack.c.bf16 %v63_v12, %v62_v11  ;;  %v511_v26 = vpack.c.bf16 %v81_v20, %v80_v19 }
  0x15   :  { %502 = vmatpush3.bf16.msra.mxu0 %v501_v62  ;;  %v15_v17 = vld [vmem:[%s918_s0 + $0x8] sm:$0xff]  ;;  %v113_v23 = vld [vmem:[%s917_s1 + $0x1f8] sm:$0xff]  ;;  %295 = vmatprep.mubr.f32.mxu1 %v17_v21  ;;  %v541_v25 = vpack.c.bf16 %v95_v16, %v94_v15  ;;  %v64_v27 = vld [vmem:[%s917_s1 + $0x70] sm:$0xff] }
  0x16   :  { %504 = vmatprep.subr.bf16.mxu0 %v503_v0  ;;  %185 = vmatprep.mubr.f32.mxu0 %v15_v17  ;;  %v65_v28 = vld [vmem:[%s917_s1 + $0x78] sm:$0xff]  ;;  %v543_v29 = vpack.c.bf16 %v113_v23, %v112_v22  ;;  %v96_v30 = vld [vmem:[%s917_s1 + $0x170] sm:$0xff]  ;;  %v14_v34 = vld [vmem:[%s918_s0] sm:$0xff] }
  0x17   :  { %534 = vmatpush3.bf16.msra.mxu1 %v533_v63  ;;  %v97_v31 = vld [vmem:[%s917_s1 + $0x178] sm:$0xff]  ;;  %v513_v32 = vpack.c.bf16 %v65_v28, %v64_v27  ;;  %v16_v35 = vld [vmem:[%s918_s0 + $0x10] sm:$0xff]  ;;  %v19_v36 = vld [vmem:[%s918_s0 + $0x28] sm:$0xff] }
  0x18   :  { %536 = vmatprep.subr.bf16.mxu1 %v535_v4  ;;  %v545_v33 = vpack.c.bf16 %v97_v31, %v96_v30  ;;  %v21_v37 = vld [vmem:[%s918_s0 + $0x38] sm:$0xff]  ;;  %v18_v38 = vld [vmem:[%s918_s0 + $0x20] sm:$0xff]  ;;  %v20_v39 = vld [vmem:[%s918_s0 + $0x30] sm:$0xff] }
  0x19   :  { %506 = vmatpush3.bf16.msra.mxu0 %v505_v10  ;;  %v23_v40 = vld [vmem:[%s918_s0 + $0x48] sm:$0xff]  ;;  %v25_v41 = vld [vmem:[%s918_s0 + $0x58] sm:$0xff]  ;;  %v22_v42 = vld [vmem:[%s918_s0 + $0x40] sm:$0xff] }
  0x1a   :  { %508 = vmatprep.subr.bf16.mxu0 %v507_v14  ;;  %v24_v43 = vld [vmem:[%s918_s0 + $0x50] sm:$0xff]  ;;  %v27_v44 = vld [vmem:[%s918_s0 + $0x68] sm:$0xff]  ;;  %v29_v45 = vld [vmem:[%s918_s0 + $0x78] sm:$0xff] }
  0x1b   :  { %538 = vmatpush3.bf16.msra.mxu1 %v537_v13  ;;  %v26_v46 = vld [vmem:[%s918_s0 + $0x60] sm:$0xff]  ;;  %v28_v47 = vld [vmem:[%s918_s0 + $0x70] sm:$0xff]  ;;  %v31_v48 = vld [vmem:[%s918_s0 + $0x88] sm:$0xff] }
  0x1c   :  { %540 = vmatprep.subr.bf16.mxu1 %v539_v18  ;;  %v33_v49 = vld [vmem:[%s918_s0 + $0x98] sm:$0xff]  ;;  %v30_v50 = vld [vmem:[%s918_s0 + $0x80] sm:$0xff]  ;;  %v32_v51 = vld [vmem:[%s918_s0 + $0x90] sm:$0xff] }
  0x1d   :  { %510 = vmatpush3.bf16.msra.mxu0 %v509_v24  ;;  %v35_v52 = vld [vmem:[%s918_s0 + $0xa8] sm:$0xff]  ;;  %v37_v53 = vld [vmem:[%s918_s0 + $0xb8] sm:$0xff]  ;;  %v34_v54 = vld [vmem:[%s918_s0 + $0xa0] sm:$0xff] }
  0x1e   :  { %512 = vmatprep.subr.bf16.mxu0 %v511_v26  ;;  %v36_v55 = vld [vmem:[%s918_s0 + $0xb0] sm:$0xff]  ;;  %v39_v56 = vld [vmem:[%s918_s0 + $0xc8] sm:$0xff]  ;;  %v41_v57 = vld [vmem:[%s918_s0 + $0xd8] sm:$0xff] }
  0x1f   :  { %542 = vmatpush3.bf16.msra.mxu1 %v541_v25  ;;  %v38_v58 = vld [vmem:[%s918_s0 + $0xc0] sm:$0xff]  ;;  %v40_v59 = vld [vmem:[%s918_s0 + $0xd0] sm:$0xff]  ;;  %v43_v60 = vld [vmem:[%s918_s0 + $0xe8] sm:$0xff] }
  0x20   :  { %544 = vmatprep.subr.bf16.mxu1 %v543_v29  ;;  %v45_v61 = vld [vmem:[%s918_s0 + $0xf8] sm:$0xff]  ;;  %v42_v62 = vld [vmem:[%s918_s0 + $0xe0] sm:$0xff]  ;;  %v44_v63 = vld [vmem:[%s918_s0 + $0xf0] sm:$0xff] }
  0x21   :  { %514 = vmatpush3.bf16.msra.mxu0 %v513_v32  ;;  %v47_v0 = vld [vmem:[%s918_s0 + $0x108] sm:$0xff]  ;;  %v49_v1 = vld [vmem:[%s918_s0 + $0x118] sm:$0xff]  ;;  %v46_v2 = vld [vmem:[%s918_s0 + $0x100] sm:$0xff] }
  0x22   :  { %v48_v3 = vld [vmem:[%s918_s0 + $0x110] sm:$0xff]  ;;  %v870_v5 = vld [vmem:[%s919_s2] ss:$0 sm:$0xff] }
  0x23   :  { %546 = vmatpush3.bf16.msra.mxu1 %v545_v33 }
  0x24   :  { %186 = vmatmul.mubr.f32.vlgmr.msra.gmra.mrb[0].mxu0 %v14_v34 }
  0x25   :  { %190 = vmatprep.mubr.f32.mxu0 %v19_v36 }
  0x26   :  { %296 = vmatmul.mubr.f32.vlgmr.msra.gmra.mrb[0].mxu1 %v16_v35 }
  0x27   :  { %300 = vmatprep.mubr.f32.mxu1 %v21_v37 }
  0x28   :  { %191 = vmatmul.mubr.f32.gmra.mrb[2].mxu0 %v18_v38 }
  0x29   :  { %195 = vmatprep.mubr.f32.mxu0 %v23_v40 }
  0x2a   :  { %301 = vmatmul.mubr.f32.gmra.mrb[2].mxu1 %v20_v39 }
  0x2b   :  { %305 = vmatprep.mubr.f32.mxu1 %v25_v41 }
  0x2c   :  { %196 = vmatmul.mubr.f32.gmra.mrb[4].mxu0 %v22_v42 }
  0x2d   :  { %200 = vmatprep.mubr.f32.mxu0 %v27_v44 }
  0x2e   :  { %306 = vmatmul.mubr.f32.gmra.mrb[4].mxu1 %v24_v43 }
  0x2f   :  { %310 = vmatprep.mubr.f32.mxu1 %v29_v45 }
  0x30   :  { %201 = vmatmul.mubr.f32.gmra.mrb[6].mxu0 %v26_v46 }
  0x31   :  { %205 = vmatprep.mubr.f32.mxu0 %v31_v48 }
  0x32   :  { %311 = vmatmul.mubr.f32.gmra.mrb[6].mxu1 %v28_v47 }
  0x33   :  { %315 = vmatprep.mubr.f32.mxu1 %v33_v49 }
  0x34   :  { %206 = vmatmul.mubr.f32.gmra.mrb[8].mxu0 %v30_v50 }
  0x35   :  { %210 = vmatprep.mubr.f32.mxu0 %v35_v52 }
  0x36   :  { %316 = vmatmul.mubr.f32.gmra.mrb[8].mxu1 %v32_v51 }
  0x37   :  { %320 = vmatprep.mubr.f32.mxu1 %v37_v53 }
  0x38   :  { %211 = vmatmul.mubr.f32.gmra.mrb[10].mxu0 %v34_v54 }
  0x39   :  { %215 = vmatprep.mubr.f32.mxu0 %v39_v56 }
  0x3a   :  { %321 = vmatmul.mubr.f32.gmra.mrb[10].mxu1 %v36_v55 }
  0x3b   :  { %325 = vmatprep.mubr.f32.mxu1 %v41_v57 }
  0x3c   :  { %216 = vmatmul.mubr.f32.gmra.mrb[12].mxu0 %v38_v58 }
  0x3d   :  { %220 = vmatprep.mubr.f32.mxu0 %v43_v60 }
  0x3e   :  { %326 = vmatmul.mubr.f32.gmra.mrb[12].mxu1 %v40_v59 }
  0x3f   :  { %330 = vmatprep.mubr.f32.mxu1 %v45_v61 }
  0x40   :  { %221 = vmatmul.mubr.f32.gmra.mrb[14].mxu0 %v42_v62 }
  0x41   :  { %225 = vmatprep.mubr.f32.mxu0 %v47_v0 }
  0x42   :  { %331 = vmatmul.mubr.f32.gmra.mrb[14].mxu1 %v44_v63 }
  0x43   :  { %335 = vmatprep.mubr.f32.mxu1 %v49_v1 }
  0x44   :  { %226 = vmatmul.mubr.f32.gmra.mrb[16].mxu0 %v46_v2 }
  0x46   :  { %336 = vmatmul.mubr.f32.gmra.mrb[16].mxu1 %v48_v3 }
  0xf7   :  { %v397_v4 = vpop.f32.mrb[0].mxu0 }
  0xf8   :  { %v398_v6 = vpop.f32.mrb[1].mxu0 }
  0xf9   :  { %v456_v7 = vpop.f32.mrb[0].mxu1  ;;  %v399_v8 = vadd.f32 %v398_v6, %v397_v4 }
  0xfa   :  { %v457_v9 = vpop.f32.mrb[1].mxu1 }
  0xfb   :  { %v458_v10 = vadd.f32 %v457_v9, %v456_v7  ;;  %v188_v11 = vadd.f32 %v399_v8, %v870_v5  ;;  %v400_v12 = vpop.f32.mrb[2].mxu0 }
  0xfc   :  { %v401_v13 = vpop.f32.mrb[3].mxu0 }
  0xfd   :  { %v459_v14 = vpop.f32.mrb[2].mxu1  ;;  %v298_v15 = vadd.f32 %v458_v10, %v188_v11  ;;  %v402_v16 = vadd.f32 %v401_v13, %v400_v12 }
  0xfe   :  { %v460_v17 = vpop.f32.mrb[3].mxu1 }
  0xff   :  { %v461_v18 = vadd.f32 %v460_v17, %v459_v14  ;;  %v341_v19 = vmax.f32 %v298_v15, 0.0  ;;  %v193_v20 = vadd.f32 %v402_v16, %v870_v5  ;;  %v403_v21 = vpop.f32.mrb[4].mxu0 }
 0x100   :  { %v404_v22 = vpop.f32.mrb[5].mxu0 }
 0x101   :  { %v462_v23 = vpop.f32.mrb[4].mxu1  ;;  %351 = vst.msk [vmem:[%s920_s3] sm:$0xff] %vm350_vm0, %v341_v19  ;;  %v303_v24 = vadd.f32 %v461_v18, %v193_v20  ;;  %v405_v25 = vadd.f32 %v404_v22, %v403_v21 }
 0x102   :  { %v463_v26 = vpop.f32.mrb[5].mxu1 }
 0x103   :  { %v464_v27 = vadd.f32 %v463_v26, %v462_v23  ;;  %v342_v28 = vmax.f32 %v303_v24, 0.0  ;;  %v198_v29 = vadd.f32 %v405_v25, %v870_v5  ;;  %v406_v30 = vpop.f32.mrb[6].mxu0 }
 0x104   :  { %v407_v31 = vpop.f32.mrb[7].mxu0 }
 0x105   :  { %v465_v32 = vpop.f32.mrb[6].mxu1  ;;  %352 = vst.msk [vmem:[%s920_s3 + $0x8] sm:$0xff] %vm350_vm0, %v342_v28  ;;  %v308_v33 = vadd.f32 %v464_v27, %v198_v29  ;;  %v408_v34 = vadd.f32 %v407_v31, %v406_v30 }
 0x106   :  { %v466_v35 = vpop.f32.mrb[7].mxu1 }
 0x107   :  { %v467_v36 = vadd.f32 %v466_v35, %v465_v32  ;;  %v343_v37 = vmax.f32 %v308_v33, 0.0  ;;  %v203_v38 = vadd.f32 %v408_v34, %v870_v5  ;;  %v409_v39 = vpop.f32.mrb[8].mxu0 }
 0x108   :  { %v410_v40 = vpop.f32.mrb[9].mxu0 }
 0x109   :  { %v468_v41 = vpop.f32.mrb[8].mxu1  ;;  %353 = vst.msk [vmem:[%s920_s3 + $0x10] sm:$0xff] %vm350_vm0, %v343_v37  ;;  %v313_v42 = vadd.f32 %v467_v36, %v203_v38  ;;  %v411_v43 = vadd.f32 %v410_v40, %v409_v39 }
 0x10a   :  { %v469_v44 = vpop.f32.mrb[9].mxu1 }
 0x10b   :  { %v470_v45 = vadd.f32 %v469_v44, %v468_v41  ;;  %v344_v46 = vmax.f32 %v313_v42, 0.0  ;;  %v208_v47 = vadd.f32 %v411_v43, %v870_v5  ;;  %v412_v48 = vpop.f32.mrb[10].mxu0 }
 0x10c   :  { %v413_v49 = vpop.f32.mrb[11].mxu0 }
 0x10d   :  { %v471_v50 = vpop.f32.mrb[10].mxu1  ;;  %354 = vst.msk [vmem:[%s920_s3 + $0x18] sm:$0xff] %vm350_vm0, %v344_v46  ;;  %v318_v51 = vadd.f32 %v470_v45, %v208_v47  ;;  %v414_v52 = vadd.f32 %v413_v49, %v412_v48 }
 0x10e   :  { %v472_v53 = vpop.f32.mrb[11].mxu1 }
 0x10f   :  { %v473_v54 = vadd.f32 %v472_v53, %v471_v50  ;;  %v345_v55 = vmax.f32 %v318_v51, 0.0  ;;  %v213_v56 = vadd.f32 %v414_v52, %v870_v5  ;;  %v415_v57 = vpop.f32.mrb[12].mxu0 }
 0x110   :  { %v416_v58 = vpop.f32.mrb[13].mxu0 }
 0x111   :  { %v474_v59 = vpop.f32.mrb[12].mxu1  ;;  %355 = vst.msk [vmem:[%s920_s3 + $0x20] sm:$0xff] %vm350_vm0, %v345_v55  ;;  %v323_v60 = vadd.f32 %v473_v54, %v213_v56  ;;  %v417_v61 = vadd.f32 %v416_v58, %v415_v57 }
 0x112   :  { %v475_v62 = vpop.f32.mrb[13].mxu1 }
 0x113   :  { %v476_v63 = vadd.f32 %v475_v62, %v474_v59  ;;  %v346_v0 = vmax.f32 %v323_v60, 0.0  ;;  %v218_v1 = vadd.f32 %v417_v61, %v870_v5  ;;  %v418_v2 = vpop.f32.mrb[14].mxu0 }
 0x114   :  { %v419_v3 = vpop.f32.mrb[15].mxu0 }
 0x115   :  { %v477_v4 = vpop.f32.mrb[14].mxu1  ;;  %356 = vst.msk [vmem:[%s920_s3 + $0x28] sm:$0xff] %vm350_vm0, %v346_v0  ;;  %v328_v6 = vadd.f32 %v476_v63, %v218_v1  ;;  %v420_v7 = vadd.f32 %v419_v3, %v418_v2 }
 0x116   :  { %v478_v8 = vpop.f32.mrb[15].mxu1 }
 0x117   :  { %v479_v9 = vadd.f32 %v478_v8, %v477_v4  ;;  %v347_v10 = vmax.f32 %v328_v6, 0.0  ;;  %v223_v11 = vadd.f32 %v420_v7, %v870_v5  ;;  %v421_v12 = vpop.f32.mrb[16].mxu0 }
 0x118   :  { %v422_v13 = vpop.f32.mrb[17].mxu0 }
 0x119   :  { %v480_v14 = vpop.f32.mrb[16].mxu1  ;;  %357 = vst.msk [vmem:[%s920_s3 + $0x30] sm:$0xff] %vm350_vm0, %v347_v10  ;;  %v333_v15 = vadd.f32 %v479_v9, %v223_v11  ;;  %v423_v16 = vadd.f32 %v422_v13, %v421_v12 }
 0x11a   :  { %v481_v17 = vpop.f32.mrb[17].mxu1 }
 0x11b   :  { %v482_v18 = vadd.f32 %v481_v17, %v480_v14  ;;  %v348_v19 = vmax.f32 %v333_v15, 0.0  ;;  %v228_v20 = vadd.f32 %v423_v16, %v870_v5 }
 0x11d   :  { %358 = vst.msk [vmem:[%s920_s3 + $0x38] sm:$0xff] %vm350_vm0, %v348_v19  ;;  %v338_v21 = vadd.f32 %v482_v18, %v228_v20 }
 0x11f   :  { %v349_v22 = vmax.f32 %v338_v21, 0.0 }
 0x121   :  { %359 = vst.msk [vmem:[%s920_s3 + $0x40] sm:$0xff] %vm350_vm0, %v349_v22 }

// kernel: trpo_critic_cnn.6
= control target key start
LH: loop header
LB: loop body
LE: loop exit
PB: predicated region body
PF: predicated region fallthrough
CT: control target
= control target key end

     0   :  { %vm103_vm0 = vcmask 523264   ;;  %s810_s1 = inlined_call_operand.vmem [shape: f32[576,64], index: 1, kind: input, shape index: {}]   ;;  %s811_s0 = inlined_call_operand.vmem [shape: f32[16,576], index: 0, kind: input, shape index: {}]   ;;  %s812_s2 = inlined_call_operand.vmem [shape: f32[1,64], index: 2, kind: input, shape index: {}]   ;;  %s813_s3 = inlined_call_operand.vmem [shape: f32[16,64], index: 3, kind: output, shape index: {}]  }
   0x1   :  { %v40_v0 = vld [vmem:[%s810_s1 + $0x80] sm:$0xff]  ;;  %v41_v1 = vld [vmem:[%s810_s1 + $0x88] sm:$0xff]  ;;  %v42_v11 = vld [vmem:[%s810_s1 + $0x90] sm:$0xff] }
   0x2   :  { %v24_v2 = vld [vmem:[%s810_s1] sm:$0xff]  ;;  %v451_v3 = vpack.c.bf16 %v41_v1, %v40_v0  ;;  %v25_v4 = vld [vmem:[%s810_s1 + $0x8] sm:$0xff]  ;;  %v43_v13 = vld [vmem:[%s810_s1 + $0x98] sm:$0xff] }
   0x3   :  { %v72_v5 = vld [vmem:[%s810_s1 + $0x180] sm:$0xff]  ;;  %v73_v6 = vld [vmem:[%s810_s1 + $0x188] sm:$0xff]  ;;  %v453_v7 = vpack.c.bf16 %v25_v4, %v24_v2  ;;  %v26_v14 = vld [vmem:[%s810_s1 + $0x10] sm:$0xff]  ;;  %v455_v16 = vpack.c.bf16 %v43_v13, %v42_v11 }
   0x4   :  { %v483_v8 = vpack.c.bf16 %v73_v6, %v72_v5  ;;  %v56_v9 = vld [vmem:[%s810_s1 + $0x100] sm:$0xff]  ;;  %v57_v10 = vld [vmem:[%s810_s1 + $0x108] sm:$0xff]  ;;  %452 = vmatprep.subr.bf16.mxu0 %v451_v3  ;;  %v27_v15 = vld [vmem:[%s810_s1 + $0x18] sm:$0xff] }
   0x5   :  { %v485_v12 = vpack.c.bf16 %v57_v10, %v56_v9  ;;  %454 = vmatpush3.bf16.msra.mxu0 %v453_v7  ;;  %v457_v17 = vpack.c.bf16 %v27_v15, %v26_v14  ;;  %v74_v18 = vld [vmem:[%s810_s1 + $0x190] sm:$0xff]  ;;  %v75_v19 = vld [vmem:[%s810_s1 + $0x198] sm:$0xff]  ;;  %v44_v23 = vld [vmem:[%s810_s1 + $0xa0] sm:$0xff] }
   0x6   :  { %484 = vmatprep.subr.bf16.mxu1 %v483_v8  ;;  %v58_v20 = vld [vmem:[%s810_s1 + $0x110] sm:$0xff]  ;;  %v487_v21 = vpack.c.bf16 %v75_v19, %v74_v18  ;;  %v59_v22 = vld [vmem:[%s810_s1 + $0x118] sm:$0xff]  ;;  %v45_v24 = vld [vmem:[%s810_s1 + $0xa8] sm:$0xff]  ;;  %456 = vmatprep.subr.bf16.mxu0 %v455_v16 }
   0x7   :  { %486 = vmatpush3.bf16.msra.mxu1 %v485_v12  ;;  %v489_v25 = vpack.c.bf16 %v59_v22, %v58_v20  ;;  %v459_v26 = vpack.c.bf16 %v45_v24, %v44_v23  ;;  %v28_v27 = vld [vmem:[%s810_s1 + $0x20] sm:$0xff]  ;;  %v29_v28 = vld [vmem:[%s810_s1 + $0x28] sm:$0xff]  ;;  %v46_v35 = vld [vmem:[%s810_s1 + $0xb0] sm:$0xff] }
   0x8   :  { %v76_v29 = vld [vmem:[%s810_s1 + $0x1a0] sm:$0xff]  ;;  %488 = vmatprep.subr.bf16.mxu1 %v487_v21  ;;  %v77_v30 = vld [vmem:[%s810_s1 + $0x1a8] sm:$0xff]  ;;  %v461_v33 = vpack.c.bf16 %v29_v28, %v28_v27  ;;  %v47_v36 = vld [vmem:[%s810_s1 + $0xb8] sm:$0xff] }
   0x9   :  { %v60_v31 = vld [vmem:[%s810_s1 + $0x120] sm:$0xff]  ;;  %v61_v32 = vld [vmem:[%s810_s1 + $0x128] sm:$0xff]  ;;  %458 = vmatpush3.bf16.msra.mxu0 %v457_v17  ;;  %v491_v34 = vpack.c.bf16 %v77_v30, %v76_v29  ;;  %v30_v37 = vld [vmem:[%s810_s1 + $0x30] sm:$0xff]  ;;  %v463_v39 = vpack.c.bf16 %v47_v36, %v46_v35 }
   0xa   :  { %460 = vmatprep.subr.bf16.mxu0 %v459_v26  ;;  %v493_v38 = vpack.c.bf16 %v61_v32, %v60_v31  ;;  %v31_v40 = vld [vmem:[%s810_s1 + $0x38] sm:$0xff]  ;;  %v78_v41 = vld [vmem:[%s810_s1 + $0x1b0] sm:$0xff]  ;;  %v48_v46 = vld [vmem:[%s810_s1 + $0xc0] sm:$0xff] }
   0xb   :  { %490 = vmatpush3.bf16.msra.mxu1 %v489_v25  ;;  %v79_v42 = vld [vmem:[%s810_s1 + $0x1b8] sm:$0xff]  ;;  %v62_v44 = vld [vmem:[%s810_s1 + $0x130] sm:$0xff]  ;;  %v49_v47 = vld [vmem:[%s810_s1 + $0xc8] sm:$0xff]  ;;  %v465_v48 = vpack.c.bf16 %v31_v40, %v30_v37 }
   0xc   :  { %492 = vmatprep.subr.bf16.mxu1 %v491_v34  ;;  %v495_v43 = vpack.c.bf16 %v79_v42, %v78_v41  ;;  %v63_v45 = vld [vmem:[%s810_s1 + $0x138] sm:$0xff]  ;;  %v80_v49 = vld [vmem:[%s810_s1 + $0x1c0] sm:$0xff]  ;;  %v81_v50 = vld [vmem:[%s810_s1 + $0x1c8] sm:$0xff]  ;;  %v467_v52 = vpack.c.bf16 %v49_v47, %v48_v46 }
   0xd   :  { %462 = vmatpush3.bf16.msra.mxu0 %v461_v33  ;;  %v497_v51 = vpack.c.bf16 %v63_v45, %v62_v44  ;;  %v32_v53 = vld [vmem:[%s810_s1 + $0x40] sm:$0xff]  ;;  %v33_v54 = vld [vmem:[%s810_s1 + $0x48] sm:$0xff]  ;;  %v499_v56 = vpack.c.bf16 %v81_v50, %v80_v49  ;;  %v50_v58 = vld [vmem:[%s810_s1 + $0xd0] sm:$0xff] }
   0xe   :  { %464 = vmatprep.subr.bf16.mxu0 %v463_v39  ;;  %v64_v55 = vld [vmem:[%s810_s1 + $0x140] sm:$0xff]  ;;  %v65_v57 = vld [vmem:[%s810_s1 + $0x148] sm:$0xff]  ;;  %v51_v59 = vld [vmem:[%s810_s1 + $0xd8] sm:$0xff]  ;;  %v469_v62 = vpack.c.bf16 %v33_v54, %v32_v53 }
   0xf   :  { %494 = vmatpush3.bf16.msra.mxu1 %v493_v38  ;;  %v82_v60 = vld [vmem:[%s810_s1 + $0x1d0] sm:$0xff]  ;;  %v83_v61 = vld [vmem:[%s810_s1 + $0x1d8] sm:$0xff]  ;;  %v501_v63 = vpack.c.bf16 %v65_v57, %v64_v55  ;;  %v471_v0 = vpack.c.bf16 %v51_v59, %v50_v58  ;;  %v52_v6 = vld [vmem:[%s810_s1 + $0xe0] sm:$0xff] }
  0x10   :  { %496 = vmatprep.subr.bf16.mxu1 %v495_v43  ;;  %v34_v1 = vld [vmem:[%s810_s1 + $0x50] sm:$0xff]  ;;  %v35_v2 = vld [vmem:[%s810_s1 + $0x58] sm:$0xff]  ;;  %v503_v4 = vpack.c.bf16 %v83_v61, %v82_v60  ;;  %v53_v7 = vld [vmem:[%s810_s1 + $0xe8] sm:$0xff] }
  0x11   :  { %466 = vmatpush3.bf16.msra.mxu0 %v465_v48  ;;  %v66_v3 = vld [vmem:[%s810_s1 + $0x150] sm:$0xff]  ;;  %v67_v5 = vld [vmem:[%s810_s1 + $0x158] sm:$0xff]  ;;  %v84_v8 = vld [vmem:[%s810_s1 + $0x1e0] sm:$0xff]  ;;  %v473_v10 = vpack.c.bf16 %v35_v2, %v34_v1  ;;  %v475_v14 = vpack.c.bf16 %v53_v7, %v52_v6 }
  0x12   :  { %468 = vmatprep.subr.bf16.mxu0 %v467_v52  ;;  %v85_v9 = vld [vmem:[%s810_s1 + $0x1e8] sm:$0xff]  ;;  %v36_v11 = vld [vmem:[%s810_s1 + $0x60] sm:$0xff]  ;;  %v505_v13 = vpack.c.bf16 %v67_v5, %v66_v3  ;;  %v54_v19 = vld [vmem:[%s810_s1 + $0xf0] sm:$0xff] }
  0x13   :  { %498 = vmatpush3.bf16.msra.mxu1 %v497_v51  ;;  %v15_v12 = vld [vmem:[%s811_s0 + $0x8] sm:$0xff]  ;;  %v68_v16 = vld [vmem:[%s810_s1 + $0x160] sm:$0xff]  ;;  %v507_v18 = vpack.c.bf16 %v85_v9, %v84_v8  ;;  %v55_v20 = vld [vmem:[%s810_s1 + $0xf8] sm:$0xff] }
  0x14   :  { %500 = vmatprep.subr.bf16.mxu1 %v499_v56  ;;  %v37_v15 = vld [vmem:[%s810_s1 + $0x68] sm:$0xff]  ;;  %174 = vmatprep.mubr.f32.mxu0 %v15_v12  ;;  %v17_v21 = vld [vmem:[%s811_s0 + $0x18] sm:$0xff]  ;;  %v86_v22 = vld [vmem:[%s810_s1 + $0x1f0] sm:$0xff]  ;;  %v479_v26 = vpack.c.bf16 %v55_v20, %v54_v19 }
  0x15   :  { %470 = vmatpush3.bf16.msra.mxu0 %v469_v62  ;;  %v69_v17 = vld [vmem:[%s810_s1 + $0x168] sm:$0xff]  ;;  %v87_v23 = vld [vmem:[%s810_s1 + $0x1f8] sm:$0xff]  ;;  %249 = vmatprep.mubr.f32.mxu1 %v17_v21  ;;  %v477_v24 = vpack.c.bf16 %v37_v15, %v36_v11  ;;  %v38_v27 = vld [vmem:[%s810_s1 + $0x70] sm:$0xff] }
  0x16   :  { %472 = vmatprep.subr.bf16.mxu0 %v471_v0  ;;  %v509_v25 = vpack.c.bf16 %v69_v17, %v68_v16  ;;  %v39_v28 = vld [vmem:[%s810_s1 + $0x78] sm:$0xff]  ;;  %v70_v29 = vld [vmem:[%s810_s1 + $0x170] sm:$0xff]  ;;  %v511_v30 = vpack.c.bf16 %v87_v23, %v86_v22  ;;  %v88_v32 = vld [vmem:[%s810_s1 + $0x200] sm:$0xff] }
  0x17   :  { %502 = vmatpush3.bf16.msra.mxu1 %v501_v63  ;;  %v71_v31 = vld [vmem:[%s810_s1 + $0x178] sm:$0xff]  ;;  %v89_v33 = vld [vmem:[%s810_s1 + $0x208] sm:$0xff]  ;;  %v481_v34 = vpack.c.bf16 %v39_v28, %v38_v27  ;;  %v90_v37 = vld [vmem:[%s810_s1 + $0x210] sm:$0xff] }
  0x18   :  { %504 = vmatprep.subr.bf16.mxu1 %v503_v4  ;;  %v513_v35 = vpack.c.bf16 %v71_v31, %v70_v29  ;;  %v515_v36 = vpack.c.bf16 %v89_v33, %v88_v32  ;;  %v91_v38 = vld [vmem:[%s810_s1 + $0x218] sm:$0xff]  ;;  %v14_v39 = vld [vmem:[%s811_s0] sm:$0xff]  ;;  %v16_v40 = vld [vmem:[%s811_s0 + $0x10] sm:$0xff] }
  0x19   :  { %474 = vmatpush3.bf16.msra.mxu0 %v473_v10  ;;  %v519_v41 = vpack.c.bf16 %v91_v38, %v90_v37  ;;  %v20_v42 = vld [vmem:[%s811_s0 + $0x30] sm:$0xff]  ;;  %v92_v43 = vld [vmem:[%s810_s1 + $0x220] sm:$0xff]  ;;  %v93_v44 = vld [vmem:[%s810_s1 + $0x228] sm:$0xff] }
  0x1a   :  { %476 = vmatprep.subr.bf16.mxu0 %v475_v14  ;;  %v22_v45 = vld [vmem:[%s811_s0 + $0x40] sm:$0xff]  ;;  %v19_v46 = vld [vmem:[%s811_s0 + $0x28] sm:$0xff]  ;;  %v523_v47 = vpack.c.bf16 %v93_v44, %v92_v43  ;;  %v21_v48 = vld [vmem:[%s811_s0 + $0x38] sm:$0xff] }
  0x1b   :  { %506 = vmatpush3.bf16.msra.mxu1 %v505_v13  ;;  %v94_v49 = vld [vmem:[%s810_s1 + $0x230] sm:$0xff]  ;;  %v95_v50 = vld [vmem:[%s810_s1 + $0x238] sm:$0xff]  ;;  %v18_v51 = vld [vmem:[%s811_s0 + $0x20] sm:$0xff] }
  0x1c   :  { %508 = vmatprep.subr.bf16.mxu1 %v507_v18  ;;  %v527_v52 = vpack.c.bf16 %v95_v50, %v94_v49  ;;  %v23_v53 = vld [vmem:[%s811_s0 + $0x48] sm:$0xff]  ;;  %v343_v55 = vld [vmem:[%s812_s2] ss:$0 sm:$0xff] }
  0x1d   :  { %478 = vmatpush3.bf16.msra.mxu0 %v477_v24 }
  0x1e   :  { %480 = vmatprep.subr.bf16.mxu0 %v479_v26 }
  0x1f   :  { %510 = vmatpush3.bf16.msra.mxu1 %v509_v25 }
  0x20   :  { %512 = vmatprep.subr.bf16.mxu1 %v511_v30 }
  0x21   :  { %482 = vmatpush3.bf16.msra.mxu0 %v481_v34 }
  0x22   :  { %516 = vmatprep.subr.bf16.mxu0 %v515_v36 }
  0x23   :  { %514 = vmatpush3.bf16.msra.mxu1 %v513_v35 }
  0x24   :  { %175 = vmatmul.mubr.f32.vlgmr.msra.gmra.mrb[0].mxu0 %v14_v39 }
  0x25   :  { %518 = vmatpush3.bf16.msra.mxu0 %v515_v36  ;;  %179 = vmatprep.mubr.f32.mxu0 %v20_v42 }
  0x26   :  { %250 = vmatmul.mubr.f32.vlgmr.msra.gmra.mrb[0].mxu1 %v16_v40  ;;  %520 = vmatprep.subr.bf16.mxu0 %v519_v41 }
  0x27   :  { %254 = vmatprep.mubr.f32.mxu1 %v22_v45 }
  0x28   :  { %180 = vmatmul.mubr.f32.gmra.mrb[2].mxu0 %v19_v46 }
  0x29   :  { %522 = vmatpush3.bf16.msra.mxu0 %v519_v41  ;;  %448 = vmatprep.mubr.msk.f32.mxu0 %vm103_vm0, %v18_v51 }
  0x2a   :  { %255 = vmatmul.mubr.f32.gmra.mrb[2].mxu1 %v21_v48  ;;  %524 = vmatprep.subr.bf16.mxu0 %v523_v47 }
  0x2d   :  { %526 = vmatpush3.bf16.msra.mxu0 %v523_v47 }
  0x2e   :  { %528 = vmatprep.subr.bf16.mxu0 %v527_v52 }
  0x31   :  { %530 = vmatpush3.bf16.msra.mxu0 %v527_v52 }
  0x34   :  { %449 = vmatmul.mubr.msk.f32.vlgmr.msra.gmra.mrb[4].mxu0 %vm103_vm0, %v23_v53 }
  0xf7   :  { %v378_v54 = vpop.f32.mrb[0].mxu0 }
  0xf8   :  { %v379_v56 = vpop.f32.mrb[1].mxu0 }
  0xf9   :  { %v416_v57 = vpop.f32.mrb[0].mxu1  ;;  %v380_v58 = vadd.f32 %v379_v56, %v378_v54 }
  0xfa   :  { %v417_v59 = vpop.f32.mrb[1].mxu1 }
  0xfb   :  { %v418_v60 = vadd.f32 %v417_v59, %v416_v57  ;;  %v177_v61 = vadd.f32 %v380_v58, %v343_v55  ;;  %v381_v62 = vpop.f32.mrb[2].mxu0 }
  0xfc   :  { %v382_v63 = vpop.f32.mrb[3].mxu0 }
  0xfd   :  { %v419_v0 = vpop.f32.mrb[2].mxu1  ;;  %v383_v1 = vadd.f32 %v382_v63, %v381_v62  ;;  %v252_v3 = vadd.f32 %v418_v60, %v177_v61 }
  0xfe   :  { %v420_v2 = vpop.f32.mrb[3].mxu1 }
  0xff   :  { %v421_v4 = vadd.f32 %v420_v2, %v419_v0  ;;  %v182_v5 = vadd.f32 %v383_v1, %v343_v55 }
 0x101   :  { %v257_v6 = vadd.f32 %v421_v4, %v182_v5 }
 0x107   :  { %v450_v7 = vpop.f32.mrb[4].mxu0 }
 0x108   :  { %v332_v8 = vadd.f32 %v450_v7, %v257_v6  ;;  %v326_v9 = vpop.f32.mrb[5].mxu0 }
 0x109   :  { %v327_v10 = vadd.f32 %v326_v9, %v252_v3 }
 0x10a   :  { %v336_v11 = vmax.f32 %v332_v8, 0.0 }
 0x10b   :  { %v335_v12 = vmax.f32 %v327_v10, 0.0 }
 0x10c   :  { %338 = vst.msk [vmem:[%s813_s3 + $0x8] sm:$0xff] %vm103_vm0, %v336_v11 }
 0x10d   :  { %337 = vst.msk [vmem:[%s813_s3] sm:$0xff] %vm103_vm0, %v335_v12 }

// kernel: trpo_critic_cnn.7
= control target key start
LH: loop header
LB: loop body
LE: loop exit
PB: predicated region body
PF: predicated region fallthrough
CT: control target
= control target key end

     0   :  { %v1219_v3 = vmov 0   ;;  %vm211_vm0 = vcmask 523264   ;;  %vm1221_vm1 = vmmov 0   ;;  %s1676_s0 = inlined_call_operand.vmem [shape: f32[320,128], index: 0, kind: input, shape index: {}]   ;;  %s1677_s1 = inlined_call_operand.vmem [shape: f32[128,320], index: 1, kind: input, shape index: {}]   ;;  %s1678_s2 = inlined_call_operand.vmem [shape: f32[128,1], index: 2, kind: input, shape index: {}]   ;;  %s1679_s4 = inlined_call_operand.vmem [shape: f32[64,1], index: 4, kind: input, shape index: {}]   ;;  %s1680_s3 = inlined_call_operand.vmem [shape: f32[64,128], index: 3, kind: input, shape index: {}]   ;;  %s1681_s5 = inlined_call_operand.vmem [shape: f32[1,64], index: 5, kind: input, shape index: {}]   ;;  %s1682_s6 = inlined_call_operand.<no memory space> [shape: f32[1,1], index: 6, kind: input, shape index: {}]   ;;  %s1683_s7 = inlined_call_operand.vmem [shape: f32[1,128], index: 7, kind: output, shape index: {}]  }
   0x1   :  { %v43_v0 = vld [vmem:[%s1676_s0 + $0x80] sm:$0xff]  ;;  %v44_v1 = vld [vmem:[%s1676_s0 + $0x88] sm:$0xff]  ;;  %1169 = vset.pattern.permute.xlu0 %v1219_v3  ;;  %1170 = vset.pattern.permute.xlu1 %v1219_v3  ;;  %v45_v6 = vld [vmem:[%s1676_s0 + $0x90] sm:$0xff] }
   0x2   :  { %v27_v2 = vld [vmem:[%s1676_s0] sm:$0xff]  ;;  %v1073_v4 = vpack.c.bf16 %v44_v1, %v43_v0  ;;  %v28_v5 = vld [vmem:[%s1676_s0 + $0x8] sm:$0xff]  ;;  %v46_v7 = vld [vmem:[%s1676_s0 + $0x98] sm:$0xff] }
   0x3   :  { %v1075_v8 = vpack.c.bf16 %v28_v5, %v27_v2  ;;  %v1077_v9 = vpack.c.bf16 %v46_v7, %v45_v6  ;;  %v29_v10 = vld [vmem:[%s1676_s0 + $0x10] sm:$0xff]  ;;  %v30_v11 = vld [vmem:[%s1676_s0 + $0x18] sm:$0xff]  ;;  %v47_v12 = vld [vmem:[%s1676_s0 + $0xa0] sm:$0xff] }
   0x4   :  { %1074 = vmatprep.subr.bf16.mxu0 %v1073_v4  ;;  %v48_v13 = vld [vmem:[%s1676_s0 + $0xa8] sm:$0xff]  ;;  %v1079_v14 = vpack.c.bf16 %v30_v11, %v29_v10  ;;  %v31_v16 = vld [vmem:[%s1676_s0 + $0x20] sm:$0xff]  ;;  %v49_v18 = vld [vmem:[%s1676_s0 + $0xb0] sm:$0xff] }
   0x5   :  { %1076 = vmatpush3.bf16.msra.mxu0 %v1075_v8  ;;  %v1081_v15 = vpack.c.bf16 %v48_v13, %v47_v12  ;;  %v32_v17 = vld [vmem:[%s1676_s0 + $0x28] sm:$0xff]  ;;  %v50_v19 = vld [vmem:[%s1676_s0 + $0xb8] sm:$0xff]  ;;  %v59_v20 = vld [vmem:[%s1676_s0 + $0x100] sm:$0xff] }
   0x6   :  { %1078 = vmatprep.subr.bf16.mxu0 %v1077_v9  ;;  %v60_v21 = vld [vmem:[%s1676_s0 + $0x108] sm:$0xff]  ;;  %v1083_v22 = vpack.c.bf16 %v32_v17, %v31_v16  ;;  %v33_v23 = vld [vmem:[%s1676_s0 + $0x30] sm:$0xff]  ;;  %v1085_v25 = vpack.c.bf16 %v50_v19, %v49_v18  ;;  %v34_v26 = vld [vmem:[%s1676_s0 + $0x38] sm:$0xff] }
   0x7   :  { %v1105_v24 = vpack.c.bf16 %v60_v21, %v59_v20  ;;  %v61_v27 = vld [vmem:[%s1676_s0 + $0x110] sm:$0xff]  ;;  %v62_v28 = vld [vmem:[%s1676_s0 + $0x118] sm:$0xff]  ;;  %v51_v29 = vld [vmem:[%s1676_s0 + $0xc0] sm:$0xff]  ;;  %v1087_v34 = vpack.c.bf16 %v34_v26, %v33_v23 }
   0x8   :  { %v52_v30 = vld [vmem:[%s1676_s0 + $0xc8] sm:$0xff]  ;;  %v1109_v31 = vpack.c.bf16 %v62_v28, %v61_v27  ;;  %v63_v32 = vld [vmem:[%s1676_s0 + $0x120] sm:$0xff]  ;;  %v65_v40 = vld [vmem:[%s1676_s0 + $0x130] sm:$0xff] }
   0x9   :  { %1080 = vmatpush3.bf16.msra.mxu0 %v1079_v14  ;;  %1106 = vmatprep.subr.bf16.mxu1 %v1105_v24  ;;  %v64_v33 = vld [vmem:[%s1676_s0 + $0x128] sm:$0xff]  ;;  %v35_v35 = vld [vmem:[%s1676_s0 + $0x40] sm:$0xff]  ;;  %v1089_v38 = vpack.c.bf16 %v52_v30, %v51_v29  ;;  %v66_v41 = vld [vmem:[%s1676_s0 + $0x138] sm:$0xff] }
   0xa   :  { %1082 = vmatprep.subr.bf16.mxu0 %v1081_v15  ;;  %1108 = vmatpush3.bf16.msra.mxu1 %v1105_v24  ;;  %v1113_v36 = vpack.c.bf16 %v64_v33, %v63_v32  ;;  %v68_v37 = vld [vmem:[%s1677_s1 + $0x8] sm:$0xff]  ;;  %v53_v42 = vld [vmem:[%s1676_s0 + $0xd0] sm:$0xff]  ;;  %v54_v43 = vld [vmem:[%s1676_s0 + $0xd8] sm:$0xff]  ;;  %v1117_v46 = vpack.c.bf16 %v66_v41, %v65_v40 }
   0xb   :  { %1110 = vmatprep.subr.bf16.mxu1 %v1109_v31  ;;  %v36_v39 = vld [vmem:[%s1676_s0 + $0x48] sm:$0xff]  ;;  %324 = vmatprep.mubr.f32.mxu0 %v68_v37  ;;  %v69_v44 = vld [vmem:[%s1677_s1 + $0x10] sm:$0xff]  ;;  %v1093_v47 = vpack.c.bf16 %v54_v43, %v53_v42  ;;  %v38_v49 = vld [vmem:[%s1676_s0 + $0x58] sm:$0xff] }
   0xc   :  { %986 = vmatprep.mubr.msk.f32.mxu1 %vm211_vm0, %v69_v44  ;;  %v1091_v45 = vpack.c.bf16 %v36_v39, %v35_v35  ;;  %v37_v48 = vld [vmem:[%s1676_s0 + $0x50] sm:$0xff]  ;;  %v55_v50 = vld [vmem:[%s1676_s0 + $0xe0] sm:$0xff]  ;;  %v56_v51 = vld [vmem:[%s1676_s0 + $0xe8] sm:$0xff] }
   0xd   :  { %1084 = vmatpush3.bf16.msra.mxu0 %v1083_v22  ;;  %v1095_v52 = vpack.c.bf16 %v38_v49, %v37_v48  ;;  %v1097_v53 = vpack.c.bf16 %v56_v51, %v55_v50  ;;  %v39_v54 = vld [vmem:[%s1676_s0 + $0x60] sm:$0xff]  ;;  %v40_v55 = vld [vmem:[%s1676_s0 + $0x68] sm:$0xff]  ;;  %v57_v56 = vld [vmem:[%s1676_s0 + $0xf0] sm:$0xff] }
   0xe   :  { %1086 = vmatprep.subr.bf16.mxu0 %v1085_v25  ;;  %1112 = vmatpush3.bf16.msra.mxu1 %v1109_v31  ;;  %v58_v57 = vld [vmem:[%s1676_s0 + $0xf8] sm:$0xff]  ;;  %v72_v58 = vld [vmem:[%s1677_s1 + $0x28] sm:$0xff]  ;;  %v1099_v59 = vpack.c.bf16 %v40_v55, %v39_v54  ;;  %v75_v60 = vld [vmem:[%s1677_s1 + $0x40] sm:$0xff] }
   0xf   :  { %1114 = vmatprep.subr.bf16.mxu1 %v1113_v36  ;;  %v1101_v61 = vpack.c.bf16 %v58_v57, %v57_v56  ;;  %v41_v62 = vld [vmem:[%s1676_s0 + $0x70] sm:$0xff]  ;;  %v42_v63 = vld [vmem:[%s1676_s0 + $0x78] sm:$0xff]  ;;  %v115_v3 = vld [vmem:[%s1678_s2] sm:$0xff] }
  0x10   :  { %v78_v0 = vld [vmem:[%s1677_s1 + $0x58] sm:$0xff]  ;;  %v1103_v1 = vpack.c.bf16 %v42_v63, %v41_v62  ;;  %v81_v2 = vld [vmem:[%s1677_s1 + $0x70] sm:$0xff]  ;;  %133 = vperm.xlu0 %1169, %v115_v3   ;;  %v84_v5 = vld [vmem:[%s1677_s1 + $0x88] sm:$0xff] }
  0x11   :  { %1088 = vmatpush3.bf16.msra.mxu0 %v1087_v34  ;;  %v117_v4 = vld [vmem:[%s1678_s2 + $0x10] sm:$0xff]  ;;  %v116_v6 = vld [vmem:[%s1678_s2 + $0x8] sm:$0xff]  ;;  %v67_v7 = vld [vmem:[%s1677_s1] sm:$0xff] }
  0x12   :  { %1090 = vmatprep.subr.bf16.mxu0 %v1089_v38  ;;  %1116 = vmatpush3.bf16.msra.mxu1 %v1113_v36  ;;  %v87_v8 = vld [vmem:[%s1677_s1 + $0xa0] sm:$0xff]  ;;  %v118_v10 = vld [vmem:[%s1678_s2 + $0x18] sm:$0xff]  ;;  %v93_v14 = vld [vmem:[%s1677_s1 + $0xd0] sm:$0xff] }
  0x13   :  { %1118 = vmatprep.subr.bf16.mxu1 %v1117_v46  ;;  %143 = vperm.xlu1 %1170, %v117_v4   ;;  %v71_v9 = vld [vmem:[%s1677_s1 + $0x20] sm:$0xff]  ;;  %v90_v11 = vld [vmem:[%s1677_s1 + $0xb8] sm:$0xff]  ;;  %v120_v16 = vld [vmem:[%s1678_s2 + $0x28] sm:$0xff] }
  0x14   :  { %138 = vperm.xlu0 %1169, %v116_v6   ;;  %v119_v12 = vld [vmem:[%s1678_s2 + $0x20] sm:$0xff]  ;;  %v70_v13 = vld [vmem:[%s1677_s1 + $0x18] sm:$0xff]  ;;  %v96_v17 = vld [vmem:[%s1677_s1 + $0xe8] sm:$0xff] }
  0x15   :  { %1092 = vmatpush3.bf16.msra.mxu0 %v1091_v45  ;;  %v74_v15 = vld [vmem:[%s1677_s1 + $0x38] sm:$0xff]  ;;  %v121_v18 = vld [vmem:[%s1678_s2 + $0x30] sm:$0xff]  ;;  %v99_v20 = vld [vmem:[%s1677_s1 + $0x100] sm:$0xff] }
  0x16   :  { %1094 = vmatprep.subr.bf16.mxu0 %v1093_v47  ;;  %1120 = vmatpush3.bf16.msra.mxu1 %v1117_v46  ;;  %v73_v19 = vld [vmem:[%s1677_s1 + $0x30] sm:$0xff]  ;;  %v122_v22 = vld [vmem:[%s1678_s2 + $0x38] sm:$0xff]  ;;  %v123_v24 = vld [vmem:[%s1678_s2 + $0x40] sm:$0xff] }
  0x17   :  { %148 = vperm.xlu1 %1170, %v118_v10   ;;  %v77_v21 = vld [vmem:[%s1677_s1 + $0x50] sm:$0xff]  ;;  %v102_v23 = vld [vmem:[%s1677_s1 + $0x118] sm:$0xff]  ;;  %v76_v25 = vld [vmem:[%s1677_s1 + $0x48] sm:$0xff] }
  0x18   :  { %153 = vperm.xlu0 %1169, %v119_v12   ;;  %v105_v26 = vld [vmem:[%s1677_s1 + $0x130] sm:$0xff]  ;;  %v80_v27 = vld [vmem:[%s1677_s1 + $0x68] sm:$0xff]  ;;  %v79_v31 = vld [vmem:[%s1677_s1 + $0x60] sm:$0xff] }
  0x19   :  { %1096 = vmatpush3.bf16.msra.mxu0 %v1095_v52  ;;  %987 = vmatmul.mubr.msk.f32.vlgmr.msra.gmra.mrb[0].mxu1 %vm211_vm0, %v72_v58  ;;  %v124_v28 = vld [vmem:[%s1678_s2 + $0x48] sm:$0xff]  ;;  %v125_v30 = vld [vmem:[%s1678_s2 + $0x50] sm:$0xff]  ;;  %v111_v32 = vld [vmem:[%s1677_s1 + $0x160] sm:$0xff] }
  0x1a   :  { %1098 = vmatprep.subr.bf16.mxu0 %v1097_v53  ;;  %989 = vmatprep.mubr.msk.f32.mxu1 %vm211_vm0, %v75_v60  ;;  %v108_v29 = vld [vmem:[%s1677_s1 + $0x148] sm:$0xff]  ;;  %v83_v33 = vld [vmem:[%s1677_s1 + $0x80] sm:$0xff]  ;;  %v126_v34 = vld [vmem:[%s1678_s2 + $0x58] sm:$0xff] }
  0x1b   :  { %158 = vperm.xlu1 %1170, %v120_v16   ;;  %v114_v35 = vld [vmem:[%s1677_s1 + $0x178] sm:$0xff]  ;;  %v127_v36 = vld [vmem:[%s1678_s2 + $0x60] sm:$0xff]  ;;  %v128_v39 = vld [vmem:[%s1678_s2 + $0x68] sm:$0xff] }
  0x1c   :  { %163 = vperm.xlu0 %1169, %v121_v18   ;;  %v82_v37 = vld [vmem:[%s1677_s1 + $0x78] sm:$0xff]  ;;  %v129_v40 = vld [vmem:[%s1678_s2 + $0x70] sm:$0xff]  ;;  %v574_v44 = vld [vmem:[%s1679_s4] sm:$0xff] }
  0x1d   :  { %1100 = vmatpush3.bf16.msra.mxu0 %v1099_v59  ;;  %990 = vmatmul.mubr.msk.f32.gmra.mrb[2].mxu1 %vm211_vm0, %v78_v0  ;;  %v86_v38 = vld [vmem:[%s1677_s1 + $0x98] sm:$0xff]  ;;  %v85_v41 = vld [vmem:[%s1677_s1 + $0x90] sm:$0xff]  ;;  %v88_v45 = vld [vmem:[%s1677_s1 + $0xa8] sm:$0xff] }
  0x1e   :  { %1102 = vmatprep.subr.bf16.mxu0 %v1101_v61  ;;  %992 = vmatprep.mubr.msk.f32.mxu1 %vm211_vm0, %v81_v2  ;;  %v89_v42 = vld [vmem:[%s1677_s1 + $0xb0] sm:$0xff]  ;;  %v130_v43 = vld [vmem:[%s1678_s2 + $0x78] sm:$0xff]  ;;  %v92_v46 = vld [vmem:[%s1677_s1 + $0xc8] sm:$0xff] }
  0x1f   :  { %168 = vperm.xlu1 %1170, %v122_v22   ;;  %v575_v47 = vld [vmem:[%s1679_s4 + $0x8] sm:$0xff]  ;;  %v576_v48 = vld [vmem:[%s1679_s4 + $0x10] sm:$0xff]  ;;  %v91_v49 = vld [vmem:[%s1677_s1 + $0xc0] sm:$0xff] }
  0x20   :  { %173 = vperm.xlu0 %1169, %v123_v24   ;;  %v95_v50 = vld [vmem:[%s1677_s1 + $0xe0] sm:$0xff]  ;;  %v577_v51 = vld [vmem:[%s1679_s4 + $0x18] sm:$0xff]  ;;  %v579_v55 = vld [vmem:[%s1679_s4 + $0x28] sm:$0xff] }
  0x21   :  { %1104 = vmatpush3.bf16.msra.mxu0 %v1103_v1  ;;  %993 = vmatmul.mubr.msk.f32.gmra.mrb[4].mxu1 %vm211_vm0, %v84_v5  ;;  %v578_v52 = vld [vmem:[%s1679_s4 + $0x20] sm:$0xff]  ;;  %v94_v53 = vld [vmem:[%s1677_s1 + $0xd8] sm:$0xff]  ;;  %v580_v56 = vld [vmem:[%s1679_s4 + $0x30] sm:$0xff] }
  0x22   :  { %995 = vmatprep.mubr.msk.f32.mxu1 %vm211_vm0, %v87_v8  ;;  %v98_v54 = vld [vmem:[%s1677_s1 + $0xf8] sm:$0xff]  ;;  %v97_v57 = vld [vmem:[%s1677_s1 + $0xf0] sm:$0xff]  ;;  %v100_v60 = vld [vmem:[%s1677_s1 + $0x108] sm:$0xff] }
  0x23   :  { %178 = vperm.xlu1 %1170, %v124_v28   ;;  %v101_v58 = vld [vmem:[%s1677_s1 + $0x110] sm:$0xff]  ;;  %v581_v59 = vld [vmem:[%s1679_s4 + $0x38] sm:$0xff]  ;;  %v104_v61 = vld [vmem:[%s1677_s1 + $0x128] sm:$0xff] }
  0x24   :  { %325 = vmatmul.mubr.f32.vlgmr.msra.gmra.mrb[0].mxu0 %v67_v7  ;;  %183 = vperm.xlu0 %1169, %v125_v30   ;;  %v103_v62 = vld [vmem:[%s1677_s1 + $0x120] sm:$0xff]  ;;  %v106_v0 = vld [vmem:[%s1677_s1 + $0x138] sm:$0xff]  ;;  %v109_v2 = vld [vmem:[%s1677_s1 + $0x150] sm:$0xff] }
  0x25   :  { %329 = vmatprep.mubr.f32.mxu0 %v71_v9  ;;  %996 = vmatmul.mubr.msk.f32.gmra.mrb[6].mxu1 %vm211_vm0, %v90_v11  ;;  %v107_v63 = vld [vmem:[%s1677_s1 + $0x140] sm:$0xff]  ;;  %v110_v1 = vld [vmem:[%s1677_s1 + $0x158] sm:$0xff]  ;;  %v113_v3 = vld [vmem:[%s1677_s1 + $0x170] sm:$0xff] }
  0x26   :  { %998 = vmatprep.mubr.msk.f32.mxu1 %vm211_vm0, %v93_v14  ;;  %v112_v4 = vld [vmem:[%s1677_s1 + $0x168] sm:$0xff]  ;;  %v566_v5 = vld [vmem:[%s1680_s3] sm:$0xff] }
  0x27   :  { %188 = vperm.xlu1 %1170, %v126_v34  }
  0x28   :  { %330 = vmatmul.mubr.f32.gmra.mrb[2].mxu0 %v70_v13  ;;  %193 = vperm.xlu0 %1169, %v127_v36  }
  0x29   :  { %334 = vmatprep.mubr.f32.mxu0 %v74_v15  ;;  %999 = vmatmul.mubr.msk.f32.gmra.mrb[8].mxu1 %vm211_vm0, %v96_v17 }
  0x2a   :  { %1001 = vmatprep.mubr.msk.f32.mxu1 %vm211_vm0, %v99_v20 }
  0x2b   :  { %198 = vperm.xlu1 %1170, %v128_v39  }
  0x2c   :  { %335 = vmatmul.mubr.f32.gmra.mrb[4].mxu0 %v73_v19  ;;  %203 = vperm.xlu0 %1169, %v129_v40  }
  0x2d   :  { %339 = vmatprep.mubr.f32.mxu0 %v77_v21  ;;  %1002 = vmatmul.mubr.msk.f32.gmra.mrb[10].mxu1 %vm211_vm0, %v102_v23 }
  0x2e   :  { %1004 = vmatprep.mubr.msk.f32.mxu1 %vm211_vm0, %v105_v26 }
  0x2f   :  { %208 = vperm.xlu1 %1170, %v130_v43  }
  0x30   :  { %340 = vmatmul.mubr.f32.gmra.mrb[6].mxu0 %v76_v25  ;;  %584 = vperm.xlu0 %1169, %v574_v44  }
  0x31   :  { %344 = vmatprep.mubr.f32.mxu0 %v80_v27  ;;  %1005 = vmatmul.mubr.msk.f32.gmra.mrb[12].mxu1 %vm211_vm0, %v108_v29 }
  0x32   :  { %1007 = vmatprep.mubr.msk.f32.mxu1 %vm211_vm0, %v111_v32 }
  0x33   :  { %589 = vperm.xlu1 %1170, %v575_v47  }
  0x34   :  { %345 = vmatmul.mubr.f32.gmra.mrb[8].mxu0 %v79_v31  ;;  %594 = vperm.xlu0 %1169, %v576_v48  }
  0x35   :  { %349 = vmatprep.mubr.f32.mxu0 %v83_v33  ;;  %1008 = vmatmul.mubr.msk.f32.gmra.mrb[14].mxu1 %vm211_vm0, %v114_v35 }
  0x36   :  { %1042 = vmatprep.mubr.f32.mxu1 %v566_v5 }
  0x37   :  { %599 = vperm.xlu1 %1170, %v577_v51  }
  0x38   :  { %350 = vmatmul.mubr.f32.gmra.mrb[10].mxu0 %v82_v37  ;;  %604 = vperm.xlu0 %1169, %v578_v52  }
  0x39   :  { %354 = vmatprep.mubr.f32.mxu0 %v86_v38 }
  0x3b   :  { %609 = vperm.xlu1 %1170, %v579_v55  }
  0x3c   :  { %355 = vmatmul.mubr.f32.gmra.mrb[12].mxu0 %v85_v41  ;;  %614 = vperm.xlu0 %1169, %v580_v56  }
  0x3d   :  { %359 = vmatprep.mubr.f32.mxu0 %v89_v42 }
  0x3f   :  { %619 = vperm.xlu1 %1170, %v581_v59  }
  0x40   :  { %360 = vmatmul.mubr.f32.gmra.mrb[14].mxu0 %v88_v45 }
  0x41   :  { %364 = vmatprep.mubr.f32.mxu0 %v92_v46 }
  0x44   :  { %365 = vmatmul.mubr.f32.gmra.mrb[16].mxu0 %v91_v49 }
  0x45   :  { %369 = vmatprep.mubr.f32.mxu0 %v95_v50 }
  0x48   :  { %370 = vmatmul.mubr.f32.gmra.mrb[18].mxu0 %v94_v53 }
  0x49   :  { %374 = vmatprep.mubr.f32.mxu0 %v98_v54 }
  0x4c   :  { %375 = vmatmul.mubr.f32.gmra.mrb[20].mxu0 %v97_v57 }
  0x4d   :  { %379 = vmatprep.mubr.f32.mxu0 %v101_v58 }
  0x50   :  { %380 = vmatmul.mubr.f32.gmra.mrb[22].mxu0 %v100_v60 }
  0x51   :  { %384 = vmatprep.mubr.f32.mxu0 %v104_v61 }
  0x54   :  { %385 = vmatmul.mubr.f32.gmra.mrb[24].mxu0 %v103_v62 }
  0x55   :  { %389 = vmatprep.mubr.f32.mxu0 %v107_v63 }
  0x58   :  { %390 = vmatmul.mubr.f32.gmra.mrb[26].mxu0 %v106_v0 }
  0x59   :  { %394 = vmatprep.mubr.f32.mxu0 %v110_v1 }
  0x5c   :  { %395 = vmatmul.mubr.f32.gmra.mrb[28].mxu0 %v109_v2 }
  0x5d   :  { %399 = vmatprep.mubr.f32.mxu0 %v113_v3 }
  0x60   :  { %400 = vmatmul.mubr.f32.gmra.mrb[30].mxu0 %v112_v4 }
  0x8f   :  { %v134_v13 = vpop.permute.xlu0 %133 }
  0x92   :  { %v144_v28 = vpop.permute.xlu1 %143 }
  0x93   :  { %v139_v23 = vpop.permute.xlu0 %138 }
  0x96   :  { %v149_v39 = vpop.permute.xlu1 %148 }
  0x97   :  { %v154_v47 = vpop.permute.xlu0 %153 }
  0x9a   :  { %v159_v57 = vpop.permute.xlu1 %158 }
  0x9b   :  { %v164_v0 = vpop.permute.xlu0 %163 }
  0xec   :  { %v988_v6 = vpop.f32.mrb[0].mxu1 }
  0xed   :  { %v471_v7 = vpop.f32.mrb[1].mxu1 }
  0xf0   :  { %v991_v8 = vpop.f32.mrb[2].mxu1 }
  0xf1   :  { %v481_v9 = vpop.f32.mrb[3].mxu1 }
  0xf4   :  { %v994_v10 = vpop.f32.mrb[4].mxu1 }
  0xf5   :  { %v491_v12 = vpop.f32.mrb[5].mxu1 }
  0xf7   :  { %v865_v11 = vpop.f32.mrb[0].mxu0 }
  0xf8   :  { %v866_v14 = vpop.f32.mrb[1].mxu0  ;;  %v1618_v16 = vpop.f32.mrb[6].mxu1 }
  0xf9   :  { %v867_v15 = vadd.f32 %v866_v14, %v865_v11  ;;  %v501_v19 = vpop.f32.mrb[7].mxu1 }
  0xfb   :  { %v868_v17 = vpop.f32.mrb[2].mxu0  ;;  %v327_v18 = vadd.f32 %v867_v15, %v134_v13  ;;  %v174_v15 = vpop.permute.xlu0 %173 }
  0xfc   :  { %v869_v20 = vpop.f32.mrb[3].mxu0  ;;  %v1620_v24 = vpop.f32.mrb[8].mxu1 }
  0xfd   :  { %v870_v21 = vadd.f32 %v869_v20, %v868_v17  ;;  %v472_v22 = vadd.f32 %v471_v7, %v327_v18  ;;  %v1622_v27 = vpop.f32.mrb[9].mxu1 }
  0xff   :  { %v332_v25 = vadd.f32 %v870_v21, %v139_v23  ;;  %v871_v26 = vpop.f32.mrb[4].mxu0  ;;  %1171 = vtanh.f32 %v472_v22 }
 0x100   :  { %v872_v29 = vpop.f32.mrb[5].mxu0  ;;  %v1624_v32 = vpop.f32.mrb[10].mxu1 }
 0x101   :  { %v477_v30 = vadd.f32 %v988_v6, %v332_v25  ;;  %v873_v31 = vadd.f32 %v872_v29, %v871_v26  ;;  %v1626_v35 = vpop.f32.mrb[11].mxu1 }
 0x103   :  { %1173 = vtanh.f32 %v477_v30  ;;  %v874_v33 = vpop.f32.mrb[6].mxu0  ;;  %v337_v34 = vadd.f32 %v873_v31, %v144_v28 }
 0x104   :  { %v875_v36 = vpop.f32.mrb[7].mxu0  ;;  %v1628_v40 = vpop.f32.mrb[12].mxu1 }
 0x105   :  { %v876_v37 = vadd.f32 %v875_v36, %v874_v33  ;;  %v482_v38 = vadd.f32 %v481_v9, %v337_v34  ;;  %v1630_v43 = vpop.f32.mrb[13].mxu1  ;;  %v184_v33 = vpop.permute.xlu0 %183 }
 0x107   :  { %v342_v41 = vadd.f32 %v876_v37, %v149_v39  ;;  %v877_v42 = vpop.f32.mrb[8].mxu0  ;;  %1175 = vtanh.f32 %v482_v38 }
 0x108   :  { %v878_v44 = vpop.f32.mrb[9].mxu0  ;;  %v1632_v48 = vpop.f32.mrb[14].mxu1 }
 0x109   :  { %v487_v45 = vadd.f32 %v991_v8, %v342_v41  ;;  %v879_v46 = vadd.f32 %v878_v44, %v877_v42  ;;  %v1634_v51 = vpop.f32.mrb[15].mxu1  ;;  %v1172_v52 = vpop.eup %1171 }
 0x10a   :  { %v169_v8 = vpop.permute.xlu1 %168 }
 0x10b   :  { %1177 = vtanh.f32 %v487_v45  ;;  %v880_v49 = vpop.f32.mrb[10].mxu0  ;;  %v347_v50 = vadd.f32 %v879_v46, %v154_v47 }
 0x10c   :  { %v881_v53 = vpop.f32.mrb[11].mxu0 }
 0x10d   :  { %v1174_v54 = vpop.eup %1173  ;;  %v882_v55 = vadd.f32 %v881_v53, %v880_v49  ;;  %v492_v56 = vadd.f32 %v491_v12, %v347_v50  ;;  %v194_v50 = vpop.permute.xlu0 %193 }
 0x10e   :  { %v1121_v58 = vpack.c.bf16 %v1174_v54, %v1172_v52  ;;  %v179_v25 = vpop.permute.xlu1 %178 }
 0x10f   :  { %v352_v59 = vadd.f32 %v882_v55, %v159_v57  ;;  %v883_v60 = vpop.f32.mrb[12].mxu0  ;;  %1179 = vtanh.f32 %v492_v56 }
 0x110   :  { %v884_v61 = vpop.f32.mrb[13].mxu0  ;;  %1122 = vmatprep.subr.bf16.mxu1 %v1121_v58 }
 0x111   :  { %v497_v62 = vadd.f32 %v994_v10, %v352_v59  ;;  %v885_v63 = vadd.f32 %v884_v61, %v883_v60  ;;  %1124 = vmatpush3.bf16.msra.mxu1 %v1121_v58  ;;  %v1176_v3 = vpop.eup %1175 }
 0x112   :  { %v189_v42 = vpop.permute.xlu1 %188 }
 0x113   :  { %1181 = vtanh.f32 %v497_v62  ;;  %v886_v1 = vpop.f32.mrb[14].mxu0  ;;  %v357_v2 = vadd.f32 %v885_v63, %v164_v0  ;;  %v204_v0 = vpop.permute.xlu0 %203 }
 0x114   :  { %v887_v4 = vpop.f32.mrb[15].mxu0 }
 0x115   :  { %v1178_v5 = vpop.eup %1177  ;;  %v888_v6 = vadd.f32 %v887_v4, %v886_v1  ;;  %v502_v7 = vadd.f32 %v501_v19, %v357_v2 }
 0x116   :  { %v1125_v9 = vpack.c.bf16 %v1178_v5, %v1176_v3  ;;  %v199_v58 = vpop.permute.xlu1 %198 }
 0x117   :  { %v362_v11 = vadd.f32 %v888_v6, %v169_v8  ;;  %v889_v12 = vpop.f32.mrb[16].mxu0  ;;  %1183 = vtanh.f32 %v502_v7 }
 0x118   :  { %v890_v13 = vpop.f32.mrb[17].mxu0  ;;  %1126 = vmatprep.subr.bf16.mxu1 %v1125_v9 }
 0x119   :  { %v507_v10 = vadd.f32 %v1618_v16, %v362_v11  ;;  %v891_v14 = vadd.f32 %v890_v13, %v889_v12  ;;  %1128 = vmatpush3.bf16.msra.mxu1 %v1125_v9  ;;  %v1180_v20 = vpop.eup %1179 }
 0x11a   :  { %v209_v7 = vpop.permute.xlu1 %208 }
 0x11b   :  { %1185 = vtanh.f32 %v507_v10  ;;  %v892_v17 = vpop.f32.mrb[18].mxu0  ;;  %v367_v18 = vadd.f32 %v891_v14, %v174_v15 }
 0x11c   :  { %v893_v21 = vpop.f32.mrb[19].mxu0 }
 0x11d   :  { %v1182_v22 = vpop.eup %1181  ;;  %v894_v23 = vadd.f32 %v893_v21, %v892_v17  ;;  %v512_v19 = vadd.f32 %v1622_v27, %v367_v18  ;;  %v569_v17 = vld [vmem:[%s1680_s3 + $0x18] sm:$0xff]  ;;  %v570_v18 = vld [vmem:[%s1680_s3 + $0x20] sm:$0xff]  ;;  %v572_v21 = vld [vmem:[%s1680_s3 + $0x30] sm:$0xff] }
 0x11e   :  { %v1129_v26 = vpack.c.bf16 %v1182_v22, %v1180_v20  ;;  %v571_v20 = vld [vmem:[%s1680_s3 + $0x28] sm:$0xff]  ;;  %v573_v22 = vld [vmem:[%s1680_s3 + $0x38] sm:$0xff] }
 0x11f   :  { %v372_v28 = vadd.f32 %v894_v23, %v179_v25  ;;  %v895_v29 = vpop.f32.mrb[20].mxu0  ;;  %1187 = vtanh.f32 %v512_v19  ;;  %v1220_v23 = vmov 0.0|0.0   ;;  %v1222_v19 = vmov 0.0   ;;  %v590_v25 = vpop.permute.xlu1 %589 }
 0x120   :  { %v896_v30 = vpop.f32.mrb[21].mxu0  ;;  %1130 = vmatprep.subr.bf16.mxu1 %v1129_v26 }
 0x121   :  { %v517_v16 = vadd.f32 %v1620_v24, %v372_v28  ;;  %v897_v31 = vadd.f32 %v896_v30, %v895_v29  ;;  %1132 = vmatpush3.bf16.msra.mxu1 %v1129_v26  ;;  %v1184_v37 = vpop.eup %1183  ;;  %v585_v26 = vpop.permute.xlu0 %584 }
 0x123   :  { %1189 = vtanh.f32 %v517_v16  ;;  %v898_v34 = vpop.f32.mrb[22].mxu0  ;;  %v377_v36 = vadd.f32 %v897_v31, %v184_v33  ;;  %v600_v28 = vpop.permute.xlu1 %599 }
 0x124   :  { %v899_v38 = vpop.f32.mrb[23].mxu0 }
 0x125   :  { %v1186_v39 = vpop.eup %1185  ;;  %v900_v41 = vadd.f32 %v899_v38, %v898_v34  ;;  %v522_v27 = vadd.f32 %v1626_v35, %v377_v36  ;;  %v595_v30 = vpop.permute.xlu0 %594 }
 0x126   :  { %v1133_v44 = vpack.c.bf16 %v1186_v39, %v1184_v37 }
 0x127   :  { %v382_v45 = vadd.f32 %v900_v41, %v189_v42  ;;  %v901_v46 = vpop.f32.mrb[24].mxu0  ;;  %1191 = vtanh.f32 %v522_v27  ;;  %v610_v38 = vpop.permute.xlu1 %609 }
 0x128   :  { %v902_v47 = vpop.f32.mrb[25].mxu0  ;;  %1134 = vmatprep.subr.bf16.mxu1 %v1133_v44 }
 0x129   :  { %v527_v24 = vadd.f32 %v1624_v32, %v382_v45  ;;  %v903_v49 = vadd.f32 %v902_v47, %v901_v46  ;;  %1136 = vmatpush3.bf16.msra.mxu1 %v1133_v44  ;;  %v1188_v54 = vpop.eup %1187  ;;  %v605_v41 = vpop.permute.xlu0 %604 }
 0x12b   :  { %1193 = vtanh.f32 %v527_v24  ;;  %v904_v52 = vpop.f32.mrb[26].mxu0  ;;  %v387_v53 = vadd.f32 %v903_v49, %v194_v50  ;;  %v620_v46 = vpop.permute.xlu1 %619 }
 0x12c   :  { %v905_v55 = vpop.f32.mrb[27].mxu0 }
 0x12d   :  { %v1190_v56 = vpop.eup %1189  ;;  %v906_v57 = vadd.f32 %v905_v55, %v904_v52  ;;  %v532_v35 = vadd.f32 %v1630_v43, %v387_v53  ;;  %v615_v49 = vpop.permute.xlu0 %614 }
 0x12e   :  { %v1137_v59 = vpack.c.bf16 %v1190_v56, %v1188_v54 }
 0x12f   :  { %v392_v60 = vadd.f32 %v906_v57, %v199_v58  ;;  %v907_v61 = vpop.f32.mrb[28].mxu0  ;;  %1195 = vtanh.f32 %v532_v35 }
 0x130   :  { %v908_v62 = vpop.f32.mrb[29].mxu0  ;;  %1138 = vmatprep.subr.bf16.mxu1 %v1137_v59 }
 0x131   :  { %v537_v32 = vadd.f32 %v1628_v40, %v392_v60  ;;  %v909_v63 = vadd.f32 %v908_v62, %v907_v61  ;;  %1140 = vmatpush3.bf16.msra.mxu1 %v1137_v59  ;;  %v1192_v3 = vpop.eup %1191 }
 0x133   :  { %1197 = vtanh.f32 %v537_v32  ;;  %v910_v1 = vpop.f32.mrb[30].mxu0  ;;  %v397_v2 = vadd.f32 %v909_v63, %v204_v0  ;;  %v735_v63 = vld [vmem:[%s1681_s5] sm:$0x1]  ;;  %v737_v0 = vstv %s1682_s6 }
 0x134   :  { %v911_v4 = vpop.f32.mrb[31].mxu0 }
 0x135   :  { %v1194_v5 = vpop.eup %1193  ;;  %v912_v6 = vadd.f32 %v911_v4, %v910_v1  ;;  %v542_v43 = vadd.f32 %v1634_v51, %v397_v2  ;;  %v567_v51 = vld [vmem:[%s1680_s3 + $0x8] sm:$0xff] }
 0x136   :  { %v1141_v8 = vpack.c.bf16 %v1194_v5, %v1192_v3 }
 0x137   :  { %v402_v9 = vadd.f32 %v912_v6, %v209_v7  ;;  %1199 = vtanh.f32 %v542_v43 }
 0x138   :  { %1142 = vmatprep.subr.bf16.mxu1 %v1141_v8 }
 0x139   :  { %v547_v11 = vadd.f32 %v1632_v48, %v402_v9  ;;  %1144 = vmatpush3.bf16.msra.mxu1 %v1141_v8  ;;  %v1196_v40 = vpop.eup %1195  ;;  %v568_v48 = vld [vmem:[%s1680_s3 + $0x10] sm:$0xff] }
 0x13b   :  { %1201 = vtanh.f32 %v547_v11 }
 0x13d   :  { %v1198_v12 = vpop.eup %1197 }
 0x13e   :  { %v1145_v13 = vpack.c.bf16 %v1198_v12, %v1196_v40 }
 0x140   :  { %1146 = vmatprep.subr.bf16.mxu1 %v1145_v13 }
 0x141   :  { %1148 = vmatpush3.bf16.msra.mxu1 %v1145_v13  ;;  %v1200_v10 = vpop.eup %1199 }
 0x145   :  { %v1202_v14 = vpop.eup %1201 }
 0x146   :  { %v1149_v15 = vpack.c.bf16 %v1202_v14, %v1200_v10 }
 0x148   :  { %1150 = vmatprep.subr.bf16.mxu1 %v1149_v15 }
 0x149   :  { %1152 = vmatpush3.bf16.msra.mxu1 %v1149_v15 }
 0x14a   :  { %1153 = vmatprep.subr.bf16.mxu1 %v1220_v23 }
 0x14c   :  { %1043 = vmatmul.mubr.f32.vlgmr.msra.gmra.mrb[16].mxu1 %v567_v51 }
 0x14d   :  { %1045 = vmatprep.mubr.f32.mxu1 %v568_v48 }
 0x150   :  { %1046 = vmatmul.mubr.f32.gmra.mrb[18].mxu1 %v569_v17 }
 0x151   :  { %1048 = vmatprep.mubr.f32.mxu1 %v570_v18 }
 0x154   :  { %1049 = vmatmul.mubr.f32.gmra.mrb[20].mxu1 %v571_v20 }
 0x155   :  { %1051 = vmatprep.mubr.f32.mxu1 %v572_v21 }
 0x158   :  { %1052 = vmatmul.mubr.f32.gmra.mrb[22].mxu1 %v573_v22 }
 0x159   :  { %1070 = vmatprep.mubr.msk.f32.mxu1 %vm1221_vm1, %v1222_v19 }
 0x21f   :  { %v1044_v29 = vpop.f32.mrb[16].mxu1 }
 0x220   :  { %v694_v16 = vadd.f32 %v1044_v29, %v590_v25  ;;  %v688_v31 = vpop.f32.mrb[17].mxu1 }
 0x221   :  { %v689_v33 = vadd.f32 %v688_v31, %v585_v26 }
 0x222   :  { %1203 = vtanh.f32 %v694_v16 }
 0x223   :  { %1205 = vtanh.f32 %v689_v33  ;;  %v1047_v34 = vpop.f32.mrb[18].mxu1 }
 0x224   :  { %v704_v36 = vadd.f32 %v1047_v34, %v600_v28  ;;  %v698_v37 = vpop.f32.mrb[19].mxu1 }
 0x225   :  { %v699_v39 = vadd.f32 %v698_v37, %v595_v30 }
 0x226   :  { %1207 = vtanh.f32 %v704_v36 }
 0x227   :  { %1209 = vtanh.f32 %v699_v39  ;;  %v1050_v27 = vpop.f32.mrb[20].mxu1 }
 0x228   :  { %v714_v42 = vadd.f32 %v1050_v27, %v610_v38  ;;  %v708_v44 = vpop.f32.mrb[21].mxu1 }
 0x229   :  { %v709_v45 = vadd.f32 %v708_v44, %v605_v41 }
 0x22a   :  { %1211 = vtanh.f32 %v714_v42 }
 0x22b   :  { %1213 = vtanh.f32 %v709_v45  ;;  %v1053_v47 = vpop.f32.mrb[22].mxu1 }
 0x22c   :  { %v1204_v24 = vpop.eup %1203  ;;  %v724_v50 = vadd.f32 %v1053_v47, %v620_v46  ;;  %v718_v52 = vpop.f32.mrb[23].mxu1 }
 0x22d   :  { %v1206_v53 = vpop.eup %1205  ;;  %v719_v54 = vadd.f32 %v718_v52, %v615_v49 }
 0x22e   :  { %1215 = vtanh.f32 %v724_v50  ;;  %v1154_v55 = vpack.c.bf16 %v1204_v24, %v1206_v53 }
 0x22f   :  { %1217 = vtanh.f32 %v719_v54 }
 0x230   :  { %v1208_v56 = vpop.eup %1207  ;;  %1155 = vmatpush3.bf16.msra.mxu1 %v1154_v55 }
 0x231   :  { %v1210_v57 = vpop.eup %1209  ;;  %1156 = vmatprep.subr.bf16.mxu1 %v1220_v23 }
 0x232   :  { %v1157_v35 = vpack.c.bf16 %v1208_v56, %v1210_v57 }
 0x234   :  { %v1212_v58 = vpop.eup %1211  ;;  %1158 = vmatpush3.bf16.msra.mxu1 %v1157_v35 }
 0x235   :  { %v1214_v59 = vpop.eup %1213  ;;  %1159 = vmatprep.subr.bf16.mxu1 %v1220_v23 }
 0x236   :  { %v1160_v60 = vpack.c.bf16 %v1212_v58, %v1214_v59 }
 0x238   :  { %v1216_v61 = vpop.eup %1215  ;;  %1161 = vmatpush3.bf16.msra.mxu1 %v1160_v60 }
 0x239   :  { %v1218_v62 = vpop.eup %1217  ;;  %1162 = vmatprep.subr.bf16.mxu1 %v1220_v23 }
 0x23a   :  { %v1163_v32 = vpack.c.bf16 %v1216_v61, %v1218_v62 }
 0x23c   :  { %1164 = vmatpush3.bf16.msra.mxu1 %v1163_v32 }
 0x23f   :  { %1071 = vmatmul.mubr.msk.f32.vlgmr.msra.gmra.mrb[24].mxu1 %vm211_vm0, %v735_v63 }
 0x312   :  { %v807_v1 = vpop.f32.mrb[24].mxu1 }
 0x313   :  { %v808_v2 = vadd.f32 %v807_v1, %v737_v0  ;;  %v1072_v3 = vpop.f32.mrb[25].mxu1 }
 0x315   :  { %811 = vst [vmem:[%s1683_s7] sm:$0x1] %v808_v2 }

</bundles_post_ra>
